<compile_context>
chip_gen: v5e
topology: v5e:2x2
jax: 0.10.0
libtpu: 0.0.40
codegen_flags: <defaults>
</compile_context>

<pallas_src>
import jax
import jax.numpy as jnp
from jax.experimental import pallas as pl
from jax.experimental.pallas import tpu as pltpu

# ----------------------------- module config --------------------------------
IN_DIMS = 128                    # in_dims
TOKEN_DIM = 128                  # token_dim
NUM_HEADS = 2                    # num_heads
D = TOKEN_DIM * NUM_HEADS        # to_query / to_key / Proj width = 256
SCALE = TOKEN_DIM ** (-0.5)      # scale_factor
EPS = 1e-12                      # F.normalize default eps
EPS_SQ = EPS * EPS


# ------------------------------- Pallas kernel ------------------------------
def _eaa_kernel(x_ref, wqk_ref, bqk_ref, wg_ref, w2_ref, b2_ref, o_ref):
    """Bt batch elements per step: x (Bt, N, C) -> out (Bt, N, TOKEN_DIM)."""
    Bt, N, C = x_ref.shape
    M = Bt * N

    x = x_ref[...].reshape(M, C)                                       # bf16 (M, C)

    # Fused query/key projection: (M, C) @ (C, 2D) on the MXU, bf16 in / f32 acc.
    qk = jnp.dot(x, wqk_ref[...], preferred_element_type=jnp.float32) + bqk_ref[...]
    q = qk[:, :D]                                                      # (M, D) f32
    k = qk[:, D:]                                                      # (M, D) f32

    # F.normalize(dim=-1):  1/max(sqrt(s), eps) == rsqrt(max(s, eps^2))  -> EUP rsqrt
    q = q * jax.lax.rsqrt(jnp.maximum(jnp.sum(q * q, axis=-1, keepdims=True), EPS_SQ))
    k = k * jax.lax.rsqrt(jnp.maximum(jnp.sum(k * k, axis=-1, keepdims=True), EPS_SQ))

    # query_weight * scale: lane-reduce against (w_g * scale) (scale pre-folded).
    a = jnp.sum(q * wg_ref[...], axis=-1, keepdims=True)               # (M, 1)

    # F.normalize(A, dim=1): per batch element over the sequence axis (explicit).
    a = a.reshape(Bt, N, 1)
    a = a * jax.lax.rsqrt(jnp.maximum(jnp.sum(a * a, axis=1, keepdims=True), EPS_SQ))

    # G = sum_n A_n * q_n ; broadcast over tokens and gate the keys.
    q3 = q.reshape(Bt, N, D)
    g = jnp.sum(a * q3, axis=1, keepdims=True)                         # (Bt, 1, D)
    gk = (g * k.reshape(Bt, N, D)).reshape(M, D)                       # (M, D)

    # Fused Proj+final:  [G*k | q] @ [[Wp@Wf],[Wf]] + (bp@Wf + bf)   (K = 512)
    fused_in = jnp.concatenate(
        [gk.astype(jnp.bfloat16), q.astype(jnp.bfloat16)], axis=-1)    # (M, 2D) bf16
    out = jnp.dot(fused_in, w2_ref[...], preferred_element_type=jnp.float32) + b2_ref[...]
    o_ref[...] = out.reshape(Bt, N, TOKEN_DIM)


# --------------------------- one-time weight fusion --------------------------
def prepare_params(params):
    """Hoisted out of the forward path: run once, reuse for every call."""
    wqk = jnp.concatenate([params['wq'], params['wk']], axis=1)        # (C, 2D)
    bqk = jnp.concatenate([params['bq'], params['bk']], axis=1)        # (1, 2D)
    wg = params['w_g'].T * SCALE                                       # (1, D), scale folded
    wpf = params['wp'] @ params['wf']                                  # (D, TOKEN_DIM)
    w2 = jnp.concatenate([wpf, params['wf']], axis=0)                  # (2D, TOKEN_DIM)
    b2 = params['bp'] @ params['wf'] + params['bf']                    # (1, TOKEN_DIM)
    return {
        'wqk': wqk.astype(jnp.bfloat16),    # MXU operand
        'bqk': bqk.astype(jnp.float32),     # VPU add -> keep f32
        'wg':  wg.astype(jnp.float32),      # VPU lane-reduce -> keep f32
        'w2':  w2.astype(jnp.bfloat16),     # MXU operand
        'b2':  b2.astype(jnp.float32),      # VPU add -> keep f32
    }


# ------------------------------- wrapper -------------------------------------
def eaa_pallas(x, prep, batch_block=None):
    B, N, C = x.shape
    assert C == IN_DIMS
    if batch_block is None:
        # >=2 grid steps keeps both v7x TensorCores busy; on single-TC chips
        # (v5e/v6e) the extra step only costs ~0.35us.  Callers on single-TC
        # chips can pass batch_block=B to collapse to one step.
        batch_block = B // 2 if (B >= 2 and B % 2 == 0) else B
    assert B % batch_block == 0
    grid = (B // batch_block,)

    return pl.pallas_call(
        _eaa_kernel,
        out_shape=jax.ShapeDtypeStruct((B, N, TOKEN_DIM), jnp.float32),
        grid_spec=pltpu.PrefetchScalarGridSpec(
            num_scalar_prefetch=0,
            grid=grid,
            in_specs=[
                pl.BlockSpec((batch_block, N, C), lambda b: (b, 0, 0)),    # x (bf16)
                pl.BlockSpec((C, 2 * D), lambda b: (0, 0)),                # [Wq | Wk]  bf16
                pl.BlockSpec((1, 2 * D), lambda b: (0, 0)),                # [bq | bk]  f32
                pl.BlockSpec((1, D), lambda b: (0, 0)),                    # w_g^T * scale
                pl.BlockSpec((2 * D, TOKEN_DIM), lambda b: (0, 0)),        # [Wp@Wf ; Wf] bf16
                pl.BlockSpec((1, TOKEN_DIM), lambda b: (0, 0)),            # bp@Wf + bf
            ],
            out_specs=pl.BlockSpec((batch_block, N, TOKEN_DIM), lambda b: (b, 0, 0)),
        ),
        compiler_params=pltpu.CompilerParams(dimension_semantics=("parallel",)),
    )(x.astype(jnp.bfloat16), prep['wqk'], prep['bqk'], prep['wg'], prep['w2'], prep['b2'])


# --------------------------- deterministic params ----------------------------
def init_params(key):
    ks = jax.random.split(key, 9)
    f = lambda k, shape, s=0.05: (s * jax.random.normal(k, shape)).astype(jnp.float32)
    return {
        'wq': f(ks[0], (IN_DIMS, D)),   'bq': f(ks[1], (1, D)),
        'wk': f(ks[2], (IN_DIMS, D)),   'bk': f(ks[3], (1, D)),
        'w_g': f(ks[4], (D, 1), 1.0),                    # nn.Parameter(torch.randn(D, 1))
        'wp': f(ks[5], (D, D)),         'bp': f(ks[6], (1, D)),
        'wf': f(ks[7], (D, TOKEN_DIM)), 'bf': f(ks[8], (1, TOKEN_DIM)),
    }


# --------------------------- pure-JAX reference ------------------------------
def eaa_ref(x, params):
    with jax.default_matmul_precision("float32"):
        q = x @ params['wq'] + params['bq']
        k = x @ params['wk'] + params['bk']
        q = q / jnp.maximum(jnp.linalg.norm(q, axis=-1, keepdims=True), EPS)
        k = k / jnp.maximum(jnp.linalg.norm(k, axis=-1, keepdims=True), EPS)
        qw = q @ params['w_g']                                         # (B, N, 1)
        A = qw * SCALE
        A = A / jnp.maximum(jnp.linalg.norm(A, axis=1, keepdims=True), EPS)
        G = jnp.sum(A * q, axis=1, keepdims=True)                      # (B, 1, D)
        out = (G * k) @ params['wp'] + params['bp'] + q
        out = out @ params['wf'] + params['bf']
    return out


if __name__ == "__main__":
    key = jax.random.PRNGKey(0)
    kx, kp = jax.random.split(key)
    B, N = 2, 64
    x = jax.random.normal(kx, (B, N, IN_DIMS), dtype=jnp.float32)
    params = init_params(kp)
    prep = prepare_params(params)

    out = jax.block_until_ready(eaa_pallas(x, prep))
    ref = eaa_ref(x, params)

    assert out.shape == (B, N, TOKEN_DIM)
    err = float(jnp.max(jnp.abs(out - ref)))
    assert err < 2e-3, f"max abs err vs reference: {err}"
    print("KERNEL_OK")
</pallas_src>

<mosaic_0001>
module attributes {stable_mosaic.version = 11 : i64} {
  func.func @_eaa_kernel(%arg0: i32, %arg1: memref<1x64x128xbf16, #tpu.memory_space<vmem>>, %arg2: memref<128x512xbf16, #tpu.memory_space<vmem>>, %arg3: memref<1x512xf32, #tpu.memory_space<vmem>>, %arg4: memref<1x256xf32, #tpu.memory_space<vmem>>, %arg5: memref<512x128xbf16, #tpu.memory_space<vmem>>, %arg6: memref<1x128xf32, #tpu.memory_space<vmem>>, %arg7: memref<1x64x128xf32, #tpu.memory_space<vmem>>) attributes {dimension_semantics = [#tpu.dimension_semantics<parallel>], iteration_bounds = array<i64: 2>, scalar_prefetch = 0 : i64, scratch_operands = 0 : i64, tpu.core_type = #tpu.core_type<tc>, window_params = [{transform_indices = @transform_0, window_bounds = array<i64: 1, 64, 128>}, {pipeline_mode = #tpu.pipeline_mode<synchronous>, transform_indices = @transform_1, window_bounds = array<i64: 128, 512>}, {pipeline_mode = #tpu.pipeline_mode<synchronous>, transform_indices = @transform_2, window_bounds = array<i64: 1, 512>}, {pipeline_mode = #tpu.pipeline_mode<synchronous>, transform_indices = @transform_3, window_bounds = array<i64: 1, 256>}, {pipeline_mode = #tpu.pipeline_mode<synchronous>, transform_indices = @transform_4, window_bounds = array<i64: 512, 128>}, {pipeline_mode = #tpu.pipeline_mode<synchronous>, transform_indices = @transform_5, window_bounds = array<i64: 1, 128>}, {transform_indices = @transform_6, window_bounds = array<i64: 1, 64, 128>}]} {
    %c0 = arith.constant 0 : index
    %c0_0 = arith.constant 0 : index
    %c0_1 = arith.constant 0 : index
    %0 = vector.load %arg1[%c0, %c0_0, %c0_1] : memref<1x64x128xbf16, #tpu.memory_space<vmem>>, vector<1x64x128xbf16>
    %1 = vector.shape_cast %0 : vector<1x64x128xbf16> to vector<64x128xbf16>
    %c0_2 = arith.constant 0 : index
    %c0_3 = arith.constant 0 : index
    %2 = vector.load %arg2[%c0_2, %c0_3] : memref<128x512xbf16, #tpu.memory_space<vmem>>, vector<128x512xbf16>
    %cst = arith.constant dense<0.000000e+00> : vector<64x512xf32>
    %3 = tpu.matmul %1, %2, %cst {dimension_numbers = #tpu.dot_dimension_numbers<[1], [0], [0], [1], [0, 0, 1, 1], [], []>} : vector<64x128xbf16>, vector<128x512xbf16>, vector<64x512xf32> -> vector<64x512xf32>
    %c0_4 = arith.constant 0 : index
    %c0_5 = arith.constant 0 : index
    %4 = vector.load %arg3[%c0_4, %c0_5] : memref<1x512xf32, #tpu.memory_space<vmem>>, vector<1x512xf32>
    %5 = vector.broadcast %4 : vector<1x512xf32> to vector<64x512xf32>
    %6 = arith.addf %3, %5 : vector<64x512xf32>
    %7 = vector.extract_strided_slice %6 {offsets = [0, 0], sizes = [64, 256], strides = [1, 1]} : vector<64x512xf32> to vector<64x256xf32>
    %8 = vector.extract_strided_slice %6 {offsets = [0, 256], sizes = [64, 256], strides = [1, 1]} : vector<64x512xf32> to vector<64x256xf32>
    %9 = arith.mulf %7, %7 : vector<64x256xf32>
    %cst_6 = arith.constant dense<0.000000e+00> : vector<64xf32>
    %10 = vector.multi_reduction <add>, %9, %cst_6 [1] : vector<64x256xf32> to vector<64xf32>
    %11 = vector.shape_cast %10 : vector<64xf32> to vector<64x1xf32>
    %cst_7 = arith.constant 1.000000e-24 : f32
    %12 = vector.broadcast %cst_7 : f32 to vector<64x1xf32>
    %13 = arith.maximumf %11, %12 : vector<64x1xf32>
    %14 = math.rsqrt %13 : vector<64x1xf32>
    %15 = vector.broadcast %14 : vector<64x1xf32> to vector<64x256xf32>
    %16 = arith.mulf %7, %15 : vector<64x256xf32>
    %17 = arith.mulf %8, %8 : vector<64x256xf32>
    %cst_8 = arith.constant dense<0.000000e+00> : vector<64xf32>
    %18 = vector.multi_reduction <add>, %17, %cst_8 [1] : vector<64x256xf32> to vector<64xf32>
    %19 = vector.shape_cast %18 : vector<64xf32> to vector<64x1xf32>
    %cst_9 = arith.constant 1.000000e-24 : f32
    %20 = vector.broadcast %cst_9 : f32 to vector<64x1xf32>
    %21 = arith.maximumf %19, %20 : vector<64x1xf32>
    %22 = math.rsqrt %21 : vector<64x1xf32>
    %23 = vector.broadcast %22 : vector<64x1xf32> to vector<64x256xf32>
    %24 = arith.mulf %8, %23 : vector<64x256xf32>
    %c0_10 = arith.constant 0 : index
    %c0_11 = arith.constant 0 : index
    %25 = vector.load %arg4[%c0_10, %c0_11] : memref<1x256xf32, #tpu.memory_space<vmem>>, vector<1x256xf32>
    %26 = vector.broadcast %25 : vector<1x256xf32> to vector<64x256xf32>
    %27 = arith.mulf %16, %26 : vector<64x256xf32>
    %cst_12 = arith.constant dense<0.000000e+00> : vector<64xf32>
    %28 = vector.multi_reduction <add>, %27, %cst_12 [1] : vector<64x256xf32> to vector<64xf32>
    %29 = vector.shape_cast %28 : vector<64xf32> to vector<64x1xf32>
    %30 = vector.shape_cast %29 : vector<64x1xf32> to vector<1x64x1xf32>
    %31 = arith.mulf %30, %30 : vector<1x64x1xf32>
    %cst_13 = arith.constant dense<0.000000e+00> : vector<1x1xf32>
    %32 = vector.multi_reduction <add>, %31, %cst_13 [1] : vector<1x64x1xf32> to vector<1x1xf32>
    %33 = vector.shape_cast %32 : vector<1x1xf32> to vector<1x1x1xf32>
    %cst_14 = arith.constant 1.000000e-24 : f32
    %34 = vector.broadcast %cst_14 : f32 to vector<1x1x1xf32>
    %35 = arith.maximumf %33, %34 : vector<1x1x1xf32>
    %36 = math.rsqrt %35 : vector<1x1x1xf32>
    %37 = vector.broadcast %36 : vector<1x1x1xf32> to vector<1x64x1xf32>
    %38 = arith.mulf %30, %37 : vector<1x64x1xf32>
    %39 = vector.shape_cast %16 : vector<64x256xf32> to vector<1x64x256xf32>
    %40 = vector.broadcast %38 : vector<1x64x1xf32> to vector<1x64x256xf32>
    %41 = arith.mulf %40, %39 : vector<1x64x256xf32>
    %cst_15 = arith.constant dense<0.000000e+00> : vector<1x256xf32>
    %42 = vector.multi_reduction <add>, %41, %cst_15 [1] : vector<1x64x256xf32> to vector<1x256xf32>
    %43 = vector.shape_cast %42 : vector<1x256xf32> to vector<1x1x256xf32>
    %44 = vector.shape_cast %24 : vector<64x256xf32> to vector<1x64x256xf32>
    %45 = vector.broadcast %43 : vector<1x1x256xf32> to vector<1x64x256xf32>
    %46 = arith.mulf %45, %44 : vector<1x64x256xf32>
    %47 = vector.shape_cast %46 : vector<1x64x256xf32> to vector<64x256xf32>
    %48 = arith.truncf %47 : vector<64x256xf32> to vector<64x256xbf16>
    %49 = arith.truncf %16 : vector<64x256xf32> to vector<64x256xbf16>
    %50 = tpu.concatenate %48, %49 in 1 : vector<64x256xbf16>, vector<64x256xbf16> -> vector<64x512xbf16>
    %c0_16 = arith.constant 0 : index
    %c0_17 = arith.constant 0 : index
    %51 = vector.load %arg5[%c0_16, %c0_17] : memref<512x128xbf16, #tpu.memory_space<vmem>>, vector<512x128xbf16>
    %cst_18 = arith.constant dense<0.000000e+00> : vector<64x128xf32>
    %52 = tpu.matmul %50, %51, %cst_18 {dimension_numbers = #tpu.dot_dimension_numbers<[1], [0], [0], [1], [0, 0, 1, 1], [], []>} : vector<64x512xbf16>, vector<512x128xbf16>, vector<64x128xf32> -> vector<64x128xf32>
    %c0_19 = arith.constant 0 : index
    %c0_20 = arith.constant 0 : index
    %53 = vector.load %arg6[%c0_19, %c0_20] : memref<1x128xf32, #tpu.memory_space<vmem>>, vector<1x128xf32>
    %54 = vector.broadcast %53 : vector<1x128xf32> to vector<64x128xf32>
    %55 = arith.addf %52, %54 : vector<64x128xf32>
    %56 = vector.shape_cast %55 : vector<64x128xf32> to vector<1x64x128xf32>
    %c0_21 = arith.constant 0 : index
    %c0_22 = arith.constant 0 : index
    %c0_23 = arith.constant 0 : index
    %57 = vector.load %arg7[%c0_21, %c0_22, %c0_23] : memref<1x64x128xf32, #tpu.memory_space<vmem>>, vector<1x64x128xf32>
    tpu.vector_store %arg7[%c0_21, %c0_22, %c0_23], %56 {strides = array<i32>} : memref<1x64x128xf32, #tpu.memory_space<vmem>>, vector<1x64x128xf32>,
    return
  }
  func.func @transform_0(%arg0: i32) -> (i32, i32, i32) {
    %c0_i32 = arith.constant 0 : i32
    %c0_i32_0 = arith.constant 0 : i32
    %c0_i32_1 = arith.constant 0 : i32
    return %arg0, %c0_i32, %c0_i32_0 : i32, i32, i32
  }
  func.func @transform_1(%arg0: i32) -> (i32, i32) {
    %c0_i32 = arith.constant 0 : i32
    %c0_i32_0 = arith.constant 0 : i32
    %c0_i32_1 = arith.constant 0 : i32
    return %c0_i32, %c0_i32_0 : i32, i32
  }
  func.func @transform_2(%arg0: i32) -> (i32, i32) {
    %c0_i32 = arith.constant 0 : i32
    %c0_i32_0 = arith.constant 0 : i32
    %c0_i32_1 = arith.constant 0 : i32
    return %c0_i32, %c0_i32_0 : i32, i32
  }
  func.func @transform_3(%arg0: i32) -> (i32, i32) {
    %c0_i32 = arith.constant 0 : i32
    %c0_i32_0 = arith.constant 0 : i32
    %c0_i32_1 = arith.constant 0 : i32
    return %c0_i32, %c0_i32_0 : i32, i32
  }
  func.func @transform_4(%arg0: i32) -> (i32, i32) {
    %c0_i32 = arith.constant 0 : i32
    %c0_i32_0 = arith.constant 0 : i32
    %c0_i32_1 = arith.constant 0 : i32
    return %c0_i32, %c0_i32_0 : i32, i32
  }
  func.func @transform_5(%arg0: i32) -> (i32, i32) {
    %c0_i32 = arith.constant 0 : i32
    %c0_i32_0 = arith.constant 0 : i32
    %c0_i32_1 = arith.constant 0 : i32
    return %c0_i32, %c0_i32_0 : i32, i32
  }
  func.func @transform_6(%arg0: i32) -> (i32, i32, i32) {
    %c0_i32 = arith.constant 0 : i32
    %c0_i32_0 = arith.constant 0 : i32
    %c0_i32_1 = arith.constant 0 : i32
    return %arg0, %c0_i32, %c0_i32_0 : i32, i32, i32
  }
}

</mosaic_0001>

<bundles_post_ra>
// kernel: tpu_custom_call.1
= control target key start
LH: loop header
LB: loop body
LE: loop exit
PB: predicated region body
PF: predicated region fallthrough
CT: control target
= control target key end

     0   :  { %11 = vsyncpa [#allocation3], 0  ;;  %s3133_s0 = inlined_call_operand.hbm [shape: bf16[2,64,128], index: 0, kind: input, shape index: {}]   ;;  %s3134_s1 = inlined_call_operand.hbm [shape: bf16[128,512], index: 1, kind: input, shape index: {}]   ;;  %s3135_s2 = inlined_call_operand.hbm [shape: f32[1,512], index: 2, kind: input, shape index: {}]   ;;  %s3136_s3 = inlined_call_operand.vmem [shape: f32[1,256], index: 3, kind: input, shape index: {}]   ;;  %s3137_s4 = inlined_call_operand.hbm [shape: bf16[512,128], index: 4, kind: input, shape index: {}]   ;;  %s3138_s5 = inlined_call_operand.vmem [shape: f32[1,128], index: 5, kind: input, shape index: {}]   ;;  %s3139_s6 = inlined_call_operand.hbm [shape: f32[2,64,128], index: 6, kind: output, shape index: {}]  }
   0x1   :  { %13 = vsyncpa [#allocation3 + $0x1], 0 }
   0x2   :  { %14 = vsyncpa [#allocation6], 0 }
   0x3   :  { %15 = vsyncpa [#allocation9], 0 }
   0x4   :  { %16 = vsyncpa [#allocation4], 0 }
   0x5   :  { %18 = vsyncpa [#allocation4 + $0x1], 0  ;;  %s2420_s21 = smov 0   ;;  %s2422_s22 = smov 0  }
   0x6   :  { %s2424_s23 = smov 0   ;;  %s2426_s24 = smov 0  }
   0x7 LB: > { %s2441_s25 = sadd.s32 4294967295, %s2374_s24   ;;  %s1700_s26 = sadd.s32 4294967294, %s2374_s24   ;;  %s2374_s24 = sphi %s2426_s24, %s3154_s24   ;;  %s2370_s23 = sphi %s2424_s23, %s3153_s23   ;;  %s2366_s22 = sphi %s2422_s22, %s3152_s22   ;;  %s2362_s21 = sphi %s2420_s21, %s3151_s21  }
   0x8   : > { %p44_p0 = scmp.ne.s32.totalorder %s2366_s22, %s2362_s21  ;;  %p45_p1 = scmp.eq.s32.totalorder %s2441_s25, 0 }
   0x9   : > { %p173_p2 = scmp.eq.s32.totalorder %s2441_s25, 1  ;;  %p179_p3 = scmp.eq.s32.totalorder %s1700_s26, 1 }
   0xa   : > { %p2450_p4 = por %p45_p1, %p44_p0  ;;  %p1701_p5 = scmp.ge.s32.totalorder %s2374_s24, 1 }
   0xb   : > { %p2455_p6 = por %p179_p3, %p44_p0  ;;  %p186_p7 = scmp.lt.s32.totalorder %s2374_s24, 3 }
   0xc   : > { %s197_s7 = sshll.u32 %s3134_s1, 4  ;;  %s2376_s9 = smov [#allocation5]   ;;  %s198_s7 = int_to_ptr.hbm [resolvable:$true] %s197_s7 }
   0xd   : > { %p2463_p8 = pnand %p1701_p5, %p186_p7  ;;  %s199_s10 = sshll.u32 %s2376_s9, 4  ;;  %s200_s10 = int_to_ptr.vmem [resolvable:$true] %s199_s10 }
   0xe   : > { %s212_s14 = sshll.u32 %s3135_s2, 4  ;;  %s2377_s15 = smov 256   ;;  %s213_s14 = int_to_ptr.hbm [resolvable:$true] %s212_s14 }
   0xf   : > { %p2078_p9 = pneg %p2463_p8  ;;  %s2378_s16 = smov 16  }
  0x10   : > { %s2379_s17 = smov [#allocation7]   ;;  %s226_s26 = sshll.u32 %s3137_s4, 4  ;;  %s227_s26 = int_to_ptr.hbm [resolvable:$true] %s226_s26 }
  0x11   : > { %p2471_p10 = pnand %p2078_p9, %p45_p1  ;;  %s214_s18 = sshll.u32 %s2379_s17, 4  ;;  %s215_s18 = int_to_ptr.vmem [resolvable:$true] %s214_s18 }
  0x12   : > { %s2380_s29 = smov [#allocation8]   ;;  %s3141_s9 = smov 4  }
  0x13   : > { %2081 = dma.hbm_to_vmem [thread:$0]  (!%p2471_p10), %s198_s7, 4096, %s200_s10, [#allocation6], %s2377_s15, %s2377_s15, %s2378_s16  }
  0x14   : > { %2084 = dma.hbm_to_vmem [thread:$0]  (!%p2471_p10), %s213_s14, 64, %s215_s18, [#allocation6]  }
  0x15   : > { %s228_s30 = sshll.u32 %s2380_s29, 4  ;;  %s3140_s7 = smov 64   ;;  %s229_s30 = int_to_ptr.vmem [resolvable:$true] %s228_s30 }
  0x16   : > { %2087 = dma.hbm_to_vmem [thread:$0]  (!%p2471_p10), %s227_s26, 4096, %s229_s30, [#allocation9], %s3140_s7, %s3140_s7, %s3141_s9  }
  0x17   : > { %s2492_s10 = sadd.s32 1, %s2374_s24   ;;  %s31_s13 = sadd.s32 1, %s2370_s23 }
  0x18   : > { %s28_s12 = ssub.s32 %s2374_s24, %s2492_s10  ;;  %p38_p13 = scmp.ne.s32.totalorder %s2370_s23, %s2366_s22 }
  0x19   : > { %p29_p12 = scmp.eq.s32.totalorder %s28_s12, 0  ;;  %p39_p0 = scmp.eq.s32.totalorder %s2374_s24, 0 }
  0x1a   : > { %p2505_p3 = por %p173_p2, %p38_p13  ;;  %p2099_p5 = scmp.lt.s32.totalorder %s2374_s24, 2 }
  0x1b   : > { %s2501_s14 = scalar_select %p29_p12, %s2370_s23, %s31_s13  }
  0x1c   : > { %s245_s11 = sand.u32 1, %s2370_s23   ;;  %s1992_s16 = sshll.u32 %s2374_s24, 5 }
  0x1d   : > { %p40_p7 = por %p39_p0, %p38_p13  ;;  %s1706_s17 = sshll.u32 %s245_s11, 5 }
  0x1e   : > { %s254_s20 = scalar_lea.hbm %s3133_s0, %s1992_s16  ;;  %s249_s29 = scalar_lea.vmem [#allocation2], %s1706_s17 }
  0x1f   : > { %s255_s26 = sshll.u32 %s254_s20, 4  ;;  %s257_s30 = sshll.u32 %s249_s29, 4  ;;  %s256_s26 = int_to_ptr.hbm [resolvable:$true] %s255_s26  ;;  %s258_s30 = int_to_ptr.vmem [resolvable:$true] %s257_s30 }
  0x20   : > { %p2515_p9 = pnand %p2099_p5, %p40_p7  ;;  %s246_s13 = scalar_lea.sflag [#allocation3], %s245_s11 }
  0x21   : > { %s2270_s7 = sshra.s32 %s256_s26, 4  ;;  %s2277_s17 = scalar_lea.hbm %s3133_s0, 64  ;;  %s2271_s7 = int_to_ptr.hbm [resolvable:$true] %s2270_s7 }
  0x22   : > { %s2272_s9 = scalar_lea.hbm %s2271_s7, 32  ;;  %p2274_p10 = pneg %p2515_p9 }
  0x23   : > { %p2273_p2 = scmp.ne.s32.totalorder %s2271_s7, %s2272_s9  ;;  %p2278_p0 = scmp.lt.s32.totalorder %s2271_s7, %s3133_s0 }
  0x24   : > { %p2279_p5 = scmp.lt.s32.totalorder %s2277_s17, %s2272_s9 }
  0x25   : > { %p2275_p12 = pnand %p2274_p10, %p2273_p2 }
  0x26   : > { %p2280_p7 = por %p2279_p5, %p2278_p0 }
  0x27   : > { %p2276_p13 = pneg %p2275_p12 }
  0x29   : > { %p2281_p11 = pnand %p2280_p7, %p2276_p13 }
  0x2b   : > { %2284 = shalt.err (!%p2281_p11)
}
  0x2c   : > { %s3148_s11 = smov 4   ;;  %s3149_s29 = smov 64  }
  0x2d   : > { %2091 = dma.hbm_to_vmem [thread:$0]  (!%p2515_p9), %s256_s26, 512, %s258_s30, %s246_s13, %s3149_s29, %s3149_s29, %s3148_s11  }
  0x2e   : > { %269 = sbr.rel (%p2463_p8) target bundleno = 805 (0x325), region = 44  ;;  %s2535_s16 = sand.u32 (!%p2463_p8), 1, %s2366_s22  }
  0x2f   : > { %s1710_s7 = sshll.u32 (!%p2463_p8), %s2535_s16, 5  ;;  %s272_s9 = scalar_lea.sflag (!%p2463_p8), [#allocation3], %s2535_s16 }
  0x30   : > { %s2539_s18 = scalar_lea.vmem (!%p2463_p8), [#allocation2], %s1710_s7 }
  0x33   : > { %2345 = dma.done.wait (%p2450_p4), %s272_s9, 512  }
  0x34   : > { %2347 = vsyncadd (%p2450_p4), %s272_s9, 4294966784 }
  0x35   : > { %2349 = dma.done.wait (%p45_p1), [#allocation6], 4160  }
  0x36   : > { %2351 = vsyncadd (%p45_p1), [#allocation6], 4294963136 }
  0x37   : > { %2353 = dma.done.wait (%p45_p1), [#allocation9], 4096  }
  0x38   : > { %2355 = vsyncadd (%p45_p1), [#allocation9], 4294963200  ;;  %v1845_v0 = vld [vmem:[#allocation5 + $0xe0] sm:$0xf]  ;;  %v2027_v1 = vld [vmem:[#allocation5 + $0xec] sm:$0xf0] }
  0x39   : > { %v2025_v2 = vld [vmem:[#allocation5 + $0xe4] sm:$0xf]  ;;  %v1846_v3 = vor.u32 %v2027_v1, %v1845_v0  ;;  %v1847_v4 = vld [vmem:[#allocation5 + $0xf0] sm:$0xf0]  ;;  %v1829_v5 = vld [vmem:[#allocation5 + $0xc0] sm:$0xf] }
  0x3a   : > { %v2023_v6 = vld [vmem:[#allocation5 + $0xcc] sm:$0xf0]  ;;  %v1850_v7 = vor.u32 %v2025_v2, %v1847_v4  ;;  %v2021_v8 = vld [vmem:[#allocation5 + $0xc4] sm:$0xf]  ;;  %v1831_v9 = vld [vmem:[#allocation5 + $0xd0] sm:$0xf0] }
  0x3b   : > { %554 = vmatpush.bf16.msra.mxu0 %v1846_v3  ;;  %v1830_v10 = vor.u32 %v2023_v6, %v1829_v5  ;;  %v1834_v11 = vor.u32 %v2021_v8, %v1831_v9  ;;  %v1813_v12 = vld [vmem:[#allocation5 + $0xa0] sm:$0xf]  ;;  %v2019_v13 = vld [vmem:[#allocation5 + $0xac] sm:$0xf0]  ;;  %v2017_v14 = vld [vmem:[#allocation5 + $0xa4] sm:$0xf] }
  0x3c   : > { %583 = vmatpush.bf16.msra.mxu1 %v1850_v7  ;;  %v1815_v15 = vld [vmem:[#allocation5 + $0xb0] sm:$0xf0]  ;;  %v1814_v16 = vor.u32 %v2019_v13, %v1813_v12  ;;  %v1797_v18 = vld [vmem:[#allocation5 + $0x80] sm:$0xf]  ;;  %v2015_v19 = vld [vmem:[#allocation5 + $0x8c] sm:$0xf0] }
  0x3d   : > { %v1818_v17 = vor.u32 %v2017_v14, %v1815_v15  ;;  %v2013_v20 = vld [vmem:[#allocation5 + $0x84] sm:$0xf]  ;;  %v1799_v21 = vld [vmem:[#allocation5 + $0x90] sm:$0xf0]  ;;  %v1798_v22 = vor.u32 %v2015_v19, %v1797_v18  ;;  %v1781_v24 = vld [vmem:[#allocation5 + $0x60] sm:$0xf] }
  0x3e   : > { %v1802_v23 = vor.u32 %v2013_v20, %v1799_v21  ;;  %v2011_v25 = vld [vmem:[#allocation5 + $0x6c] sm:$0xf0]  ;;  %v2009_v26 = vld [vmem:[#allocation5 + $0x64] sm:$0xf]  ;;  %v1783_v27 = vld [vmem:[#allocation5 + $0x70] sm:$0xf0] }
  0x3f   : > { %555 = vmatpush.bf16.msra.mxu0 %v1830_v10  ;;  %v1782_v28 = vor.u32 %v2011_v25, %v1781_v24  ;;  %v1786_v29 = vor.u32 %v2009_v26, %v1783_v27  ;;  %v1765_v30 = vld [vmem:[#allocation5 + $0x40] sm:$0xf]  ;;  %v2007_v31 = vld [vmem:[#allocation5 + $0x4c] sm:$0xf0]  ;;  %v2005_v32 = vld [vmem:[#allocation5 + $0x44] sm:$0xf] }
  0x40   : > { %584 = vmatpush.bf16.msra.mxu1 %v1834_v11  ;;  %v1767_v33 = vld [vmem:[#allocation5 + $0x50] sm:$0xf0]  ;;  %v1766_v34 = vor.u32 %v2007_v31, %v1765_v30  ;;  %v1749_v36 = vld [vmem:[#allocation5 + $0x20] sm:$0xf]  ;;  %v2003_v37 = vld [vmem:[#allocation5 + $0x2c] sm:$0xf0] }
  0x41   : > { %v1770_v35 = vor.u32 %v2005_v32, %v1767_v33  ;;  %v2001_v38 = vld [vmem:[#allocation5 + $0x24] sm:$0xf]  ;;  %v1751_v39 = vld [vmem:[#allocation5 + $0x30] sm:$0xf0]  ;;  %v1750_v40 = vor.u32 %v2003_v37, %v1749_v36  ;;  %v1733_v42 = vld [vmem:[#allocation5] sm:$0xf] }
  0x42   : > { %v1754_v41 = vor.u32 %v2001_v38, %v1751_v39  ;;  %v1999_v43 = vld [vmem:[#allocation5 + $0xc] sm:$0xf0]  ;;  %v1997_v44 = vld [vmem:[#allocation5 + $0x4] sm:$0xf]  ;;  %v1735_v45 = vld [vmem:[#allocation5 + $0x10] sm:$0xf0] }
  0x43   : > { %556 = vmatpush.bf16.msra.mxu0 %v1814_v16  ;;  %v1734_v46 = vor.u32 %v1999_v43, %v1733_v42  ;;  %v1738_v47 = vor.u32 %v1997_v44, %v1735_v45  ;;  %v2554_v48 = vld [vmem:[%s2539_s18] sm:$0xff]  ;;  %v2559_v49 = vld [vmem:[%s2539_s18 + $0x8] sm:$0xff]  ;;  %v2028_v51 = vld [vmem:[#allocation5 + $0xf4] sm:$0xf0]  ;;  %s1714_s12 = sshll.u32 %s2535_s16, 6  ;;  %s2061_s17 = sshll.u32 %s2441_s25, 6 }
  0x44   : > { %585 = vmatpush.bf16.msra.mxu1 %v1818_v17  ;;  %v1853_v50 = vld [vmem:[#allocation5 + $0xe8] sm:$0xf]  ;;  %v2026_v52 = vld [vmem:[#allocation5 + $0xec] sm:$0xf]  ;;  %v1855_v54 = vld [vmem:[#allocation5 + $0xf8] sm:$0xf0]  ;;  %s1594_s11 = scalar_lea.hbm %s3139_s6, %s2061_s17 }
  0x45   : > { %v1854_v53 = vor.u32 %v2028_v51, %v1853_v50  ;;  %v1858_v55 = vor.u32 %v2026_v52, %v1855_v54  ;;  %v2564_v56 = vld [vmem:[%s2539_s18 + $0x10] sm:$0xff]  ;;  %v2569_v57 = vld [vmem:[%s2539_s18 + $0x18] sm:$0xff]  ;;  %v1837_v58 = vld [vmem:[#allocation5 + $0xc8] sm:$0xf]  ;;  %s3082_s13 = scalar_lea.vmem [#allocation10], %s1714_s12  ;;  %s1597_s7 = sshll.u32 %s1594_s11, 4  ;;  %s1598_s7 = int_to_ptr.hbm [resolvable:$true] %s1597_s7 }
  0x46   : > { %v2024_v59 = vld [vmem:[#allocation5 + $0xd4] sm:$0xf0]  ;;  %v2022_v60 = vld [vmem:[#allocation5 + $0xcc] sm:$0xf]  ;;  %v1839_v62 = vld [vmem:[#allocation5 + $0xd8] sm:$0xf0] }
  0x47   : > { %557 = vmatpush.bf16.msra.mxu0 %v1798_v22  ;;  %612 = vmatpush.bf16.msra.mxu2 %v1854_v53  ;;  %v1838_v61 = vor.u32 %v2024_v59, %v1837_v58  ;;  %v1842_v63 = vor.u32 %v2022_v60, %v1839_v62  ;;  %v1821_v0 = vld [vmem:[#allocation5 + $0xa8] sm:$0xf]  ;;  %v2020_v1 = vld [vmem:[#allocation5 + $0xb4] sm:$0xf0]  ;;  %v2018_v2 = vld [vmem:[#allocation5 + $0xac] sm:$0xf] }
  0x48   : > { %586 = vmatpush.bf16.msra.mxu1 %v1802_v23  ;;  %641 = vmatpush.bf16.msra.mxu3 %v1858_v55  ;;  %v1822_v3 = vor.u32 %v2020_v1, %v1821_v0  ;;  %v1823_v4 = vld [vmem:[#allocation5 + $0xb8] sm:$0xf0]  ;;  %v1805_v6 = vld [vmem:[#allocation5 + $0x88] sm:$0xf]  ;;  %v2016_v7 = vld [vmem:[#allocation5 + $0x94] sm:$0xf0] }
  0x49   : > { %v1826_v5 = vor.u32 %v2018_v2, %v1823_v4  ;;  %v2014_v8 = vld [vmem:[#allocation5 + $0x8c] sm:$0xf]  ;;  %v1806_v9 = vor.u32 %v2016_v7, %v1805_v6  ;;  %v1807_v10 = vld [vmem:[#allocation5 + $0x98] sm:$0xf0]  ;;  %v1789_v12 = vld [vmem:[#allocation5 + $0x68] sm:$0xf] }
  0x4a   : > { %v1810_v11 = vor.u32 %v2014_v8, %v1807_v10  ;;  %v2012_v13 = vld [vmem:[#allocation5 + $0x74] sm:$0xf0]  ;;  %v2010_v14 = vld [vmem:[#allocation5 + $0x6c] sm:$0xf]  ;;  %v1791_v16 = vld [vmem:[#allocation5 + $0x78] sm:$0xf0] }
  0x4b   : > { %558 = vmatpush.bf16.msra.mxu0 %v1782_v28  ;;  %613 = vmatpush.bf16.msra.mxu2 %v1838_v61  ;;  %v1790_v15 = vor.u32 %v2012_v13, %v1789_v12  ;;  %v1794_v17 = vor.u32 %v2010_v14, %v1791_v16  ;;  %v1773_v18 = vld [vmem:[#allocation5 + $0x48] sm:$0xf]  ;;  %v2008_v19 = vld [vmem:[#allocation5 + $0x54] sm:$0xf0]  ;;  %v2006_v20 = vld [vmem:[#allocation5 + $0x4c] sm:$0xf] }
  0x4c   : > { %587 = vmatpush.bf16.msra.mxu1 %v1786_v29  ;;  %642 = vmatpush.bf16.msra.mxu3 %v1842_v63  ;;  %v1774_v21 = vor.u32 %v2008_v19, %v1773_v18  ;;  %v1775_v22 = vld [vmem:[#allocation5 + $0x58] sm:$0xf0]  ;;  %v1757_v24 = vld [vmem:[#allocation5 + $0x28] sm:$0xf]  ;;  %v2004_v25 = vld [vmem:[#allocation5 + $0x34] sm:$0xf0] }
  0x4d   : > { %v1778_v23 = vor.u32 %v2006_v20, %v1775_v22  ;;  %v2002_v26 = vld [vmem:[#allocation5 + $0x2c] sm:$0xf]  ;;  %v1758_v27 = vor.u32 %v2004_v25, %v1757_v24  ;;  %v1759_v28 = vld [vmem:[#allocation5 + $0x38] sm:$0xf0]  ;;  %v1741_v30 = vld [vmem:[#allocation5 + $0x8] sm:$0xf] }
  0x4e   : > { %v1762_v29 = vor.u32 %v2002_v26, %v1759_v28  ;;  %v2000_v31 = vld [vmem:[#allocation5 + $0x14] sm:$0xf0]  ;;  %v1998_v32 = vld [vmem:[#allocation5 + $0xc] sm:$0xf]  ;;  %v2573_v36 = vld [vmem:[#allocation7] sm:$0xf] }
  0x4f   : > { %559 = vmatpush.bf16.msra.mxu0 %v1766_v34  ;;  %614 = vmatpush.bf16.msra.mxu2 %v1822_v3  ;;  %v1742_v33 = vor.u32 %v2000_v31, %v1741_v30  ;;  %v1743_v34 = vld [vmem:[#allocation5 + $0x18] sm:$0xf0]  ;;  %v2577_v37 = vperm.slane %v2573_v36, 0  ;;  %v2581_v38 = vperm.slane %v2573_v36, 1  ;;  %s1595_s29 = sshll.u32 %s3082_s13, 4  ;;  %s1583_s25 = scalar_lea.sflag [#allocation4], %s2535_s16  ;;  %s1596_s29 = int_to_ptr.vmem [resolvable:$true] %s1595_s29 }
  0x50   : > { %588 = vmatpush.bf16.msra.mxu1 %v1770_v35  ;;  %643 = vmatpush.bf16.msra.mxu3 %v1826_v5  ;;  %v1746_v35 = vor.u32 %v1998_v32, %v1743_v34  ;;  %v2052_v31 = vld [vmem:[#allocation8 + $0xb8] sm:$0xff]  ;;  %v2059_v34 = vld [vmem:[#allocation8 + $0xf0] sm:$0xff]  ;;  %s2314_s9 = sshra.s32 %s1598_s7, 4  ;;  %s2320_s26 = scalar_lea.hbm %s3139_s6, 128  ;;  %s2315_s9 = int_to_ptr.hbm [resolvable:$true] %s2314_s9 }
  0x51   : > { %v2060_v32 = vld [vmem:[#allocation8 + $0xf8] sm:$0xff]  ;;  %s2316_s18 = scalar_lea.hbm %s2315_s9, 64  ;;  %p2321_p11 = scmp.lt.s32.totalorder %s2315_s9, %s3139_s6 }
  0x52   : > { %p2317_p1 = scmp.ne.s32.totalorder %s2315_s9, %s2316_s18  ;;  %p2322_p9 = scmp.lt.s32.totalorder %s2320_s26, %s2316_s18 }
  0x53   : > { %560 = vmatpush.bf16.msra.mxu0 %v1750_v40  ;;  %615 = vmatpush.bf16.msra.mxu2 %v1806_v9 }
  0x54   : > { %589 = vmatpush.bf16.msra.mxu1 %v1754_v41  ;;  %644 = vmatpush.bf16.msra.mxu3 %v1810_v11  ;;  %p2318_p4 = pnand %p2317_p1, %p2505_p3  ;;  %p2323_p2 = por %p2322_p9, %p2321_p11 }
  0x56   : > { %p2319_p8 = pneg %p2318_p4 }
  0x57   : > { %561 = vmatpush.bf16.msra.mxu0 %v1734_v46  ;;  %616 = vmatpush.bf16.msra.mxu2 %v1790_v15 }
  0x58   : > { %590 = vmatpush.bf16.msra.mxu1 %v1738_v47  ;;  %645 = vmatpush.bf16.msra.mxu3 %v1794_v17  ;;  %p2324_p10 = pnand %p2323_p2, %p2319_p8 }
  0x5a   : > { %562 = vmatmul.bf16.vlgmr.msra.gmra.mxu0 %v2554_v48 }
  0x5b   : > { %591 = vmatmul.bf16.vlgmr.msra.gmra.mxu1 %v2554_v48  ;;  %617 = vmatpush.bf16.msra.mxu2 %v1774_v21 }
  0x5c   : > { %646 = vmatpush.bf16.msra.mxu3 %v1778_v23 }
  0x5f   : > { %618 = vmatpush.bf16.msra.mxu2 %v1758_v27 }
  0x60   : > { %647 = vmatpush.bf16.msra.mxu3 %v1762_v29 }
  0x63   : > { %619 = vmatpush.bf16.msra.mxu2 %v1742_v33  ;;  %v2051_v33 = vld [vmem:[#allocation8 + $0xb0] sm:$0xff] }
  0x64   : > { %648 = vmatpush.bf16.msra.mxu3 %v1746_v35  ;;  %v2050_v35 = vld [vmem:[#allocation8 + $0xa8] sm:$0xff] }
  0x66   : > { %620 = vmatmul.bf16.vlgmr.msra.gmra.mxu2 %v2554_v48 }
  0x67   : > { %649 = vmatmul.bf16.vlgmr.msra.gmra.mxu3 %v2554_v48  ;;  %1516 = vmatpush.bf16.msrb.mxu2 %v2052_v31 }
  0x68   : > { %1545 = vmatpush.bf16.msrb.mxu3 %v2060_v32 }
  0x6a   : > { %567 = vmatmul.bf16.gmra.mxu0 %v2559_v49 }
  0x6b   : > { %596 = vmatmul.bf16.gmra.mxu1 %v2559_v49  ;;  %1517 = vmatpush.bf16.msrb.mxu2 %v2051_v33 }
  0x6c   : > { %1546 = vmatpush.bf16.msrb.mxu3 %v2059_v34 }
  0x6f   : > { %1518 = vmatpush.bf16.msrb.mxu2 %v2050_v35 }
  0x76   : > { %625 = vmatmul.bf16.gmra.mxu2 %v2559_v49 }
  0x77   : > { %654 = vmatmul.bf16.gmra.mxu3 %v2559_v49 }
  0x7a   : > { %572 = vmatmul.bf16.gmra.mxu0 %v2564_v56 }
  0x7b   : > { %601 = vmatmul.bf16.gmra.mxu1 %v2564_v56 }
  0x86   : > { %630 = vmatmul.bf16.gmra.mxu2 %v2564_v56 }
  0x87   : > { %659 = vmatmul.bf16.gmra.mxu3 %v2564_v56 }
  0x8a   : > { %577 = vmatmul.bf16.gmra.mxu0 %v2569_v57 }
  0x8b   : > { %606 = vmatmul.bf16.gmra.mxu1 %v2569_v57 }
  0x96   : > { %635 = vmatmul.bf16.gmra.mxu2 %v2569_v57 }
  0x97   : > { %664 = vmatmul.bf16.gmra.mxu3 %v2569_v57 }
  0xd7   : > { %v563_v39 = vpop.f32.mrf.mxu0 }
  0xd8   : > { %v2584_v40 = vadd.f32 %v563_v39, %v2577_v37  ;;  %v592_v41 = vpop.f32.mrf.mxu1  ;;  %v2057_v39 = vld [vmem:[#allocation8 + $0xe0] sm:$0xff] }
  0xd9   : > { %v2587_v42 = vadd.f32 %v592_v41, %v2581_v38  ;;  %v2048_v41 = vld [vmem:[#allocation8 + $0x98] sm:$0xff] }
  0xda   : > { %v670_v43 = vmul.f32 %v2584_v40, %v2584_v40 }
  0xdb   : > { %v671_v44 = vmul.f32 %v2587_v42, %v2587_v42 }
  0xdd   : > { %v686_v45 = vadd.f32 %v671_v44, %v670_v43  ;;  %v2056_v43 = vld [vmem:[#allocation8 + $0xd8] sm:$0xff]  ;;  %v2047_v44 = vld [vmem:[#allocation8 + $0x90] sm:$0xff] }
  0xdf   : > { %687 = vadd.xlane.f32.xlu0 %v686_v45  ;;  %v565_v46 = vpop.f32.mrf.mxu0  ;;  %v2055_v45 = vld [vmem:[#allocation8 + $0xd0] sm:$0xff] }
  0xe0   : > { %v2594_v47 = vadd.f32 %v565_v46, %v2577_v37  ;;  %v594_v48 = vpop.f32.mrf.mxu1  ;;  %v2046_v46 = vld [vmem:[#allocation8 + $0x88] sm:$0xff] }
  0xe1   : > { %v2597_v50 = vadd.f32 %v594_v48, %v2581_v38  ;;  %v2054_v48 = vld [vmem:[#allocation8 + $0xc8] sm:$0xff] }
  0xe2   : > { %v672_v51 = vmul.f32 %v2594_v47, %v2594_v47 }
  0xe3   : > { %v673_v52 = vmul.f32 %v2597_v50, %v2597_v50 }
  0xe5   : > { %v689_v53 = vadd.f32 %v673_v52, %v672_v51  ;;  %v2045_v52 = vld [vmem:[#allocation8 + $0x80] sm:$0xff] }
  0xe7   : > { %690 = vadd.xlane.f32.xlu0 %v689_v53  ;;  %v568_v54 = vpop.f32.mrf.mxu0  ;;  %v2053_v53 = vld [vmem:[#allocation8 + $0xc0] sm:$0xff] }
  0xe8   : > { %v2606_v55 = vadd.f32 %v568_v54, %v2577_v37  ;;  %v597_v58 = vpop.f32.mrf.mxu1 }
  0xe9   : > { %v2609_v59 = vadd.f32 %v597_v58, %v2581_v38 }
  0xea   : > { %v674_v60 = vmul.f32 %v2606_v55, %v2606_v55 }
  0xeb   : > { %v675_v61 = vmul.f32 %v2609_v59, %v2609_v59 }
  0xed   : > { %v692_v62 = vadd.f32 %v675_v61, %v674_v60 }
  0xef   : > { %693 = vadd.xlane.f32.xlu1 %v692_v62  ;;  %v570_v63 = vpop.f32.mrf.mxu0 }
  0xf0   : > { %v2616_v49 = vadd.f32 %v570_v63, %v2577_v37  ;;  %v599_v0 = vpop.f32.mrf.mxu1 }
  0xf1   : > { %v2619_v1 = vadd.f32 %v599_v0, %v2581_v38 }
  0xf2   : > { %v676_v2 = vmul.f32 %v2616_v49, %v2616_v49 }
  0xf3   : > { %v677_v3 = vmul.f32 %v2619_v1, %v2619_v1 }
  0xf5   : > { %v695_v4 = vadd.f32 %v677_v3, %v676_v2  ;;  %v2669_v2 = vpop.f32.mrf.mxu2  ;;  %v2671_v3 = vpop.f32.mrf.mxu3 }
  0xf7   : > { %696 = vadd.xlane.f32.xlu1 %v695_v4  ;;  %v573_v5 = vpop.f32.mrf.mxu0 }
  0xf8   : > { %v2628_v6 = vadd.f32 %v573_v5, %v2577_v37  ;;  %v602_v7 = vpop.f32.mrf.mxu1 }
  0xf9   : > { %v2631_v8 = vadd.f32 %v602_v7, %v2581_v38  ;;  %v958_v7 = vld [vmem:[%s3136_s3] sm:$0x3] }
  0xfa   : > { %v678_v9 = vmul.f32 %v2628_v6, %v2628_v6 }
  0xfb   : > { %v679_v10 = vmul.f32 %v2631_v8, %v2631_v8 }
  0xfd   : > { %v698_v11 = vadd.f32 %v679_v10, %v678_v9  ;;  %v2690_v31 = vpop.f32.mrf.mxu2 }
  0xff   : > { %699 = vadd.xlane.f32.xlu2 %v698_v11  ;;  %v575_v12 = vpop.f32.mrf.mxu0 }
 0x100   : > { %v2638_v56 = vadd.f32 %v575_v12, %v2577_v37  ;;  %v604_v13 = vpop.f32.mrf.mxu1 }
 0x101   : > { %v2641_v14 = vadd.f32 %v604_v13, %v2581_v38  ;;  %v2676_v13 = vperm.slane %v958_v7, 0 }
 0x102   : > { %v680_v15 = vmul.f32 %v2638_v56, %v2638_v56 }
 0x103   : > { %v681_v16 = vmul.f32 %v2641_v14, %v2641_v14 }
 0x105   : > { %v701_v17 = vadd.f32 %v681_v16, %v680_v15  ;;  %v2678_v15 = vperm.slane %v958_v7, 1 }
 0x107   : > { %702 = vadd.xlane.f32.xlu2 %v701_v17  ;;  %v578_v18 = vpop.f32.mrf.mxu0 }
 0x108   : > { %v2650_v19 = vadd.f32 %v578_v18, %v2577_v37  ;;  %v607_v20 = vpop.f32.mrf.mxu1 }
 0x109   : > { %v2653_v21 = vadd.f32 %v607_v20, %v2581_v38 }
 0x10a   : > { %v682_v22 = vmul.f32 %v2650_v19, %v2650_v19 }
 0x10b   : > { %v683_v23 = vmul.f32 %v2653_v21, %v2653_v21 }
 0x10d   : > { %v704_v24 = vadd.f32 %v683_v23, %v682_v22 }
 0x10f   : > { %705 = vadd.xlane.f32.xlu0 %v704_v24  ;;  %v580_v25 = vpop.f32.mrf.mxu0 }
 0x110   : > { %v2660_v57 = vadd.f32 %v580_v25, %v2577_v37  ;;  %v609_v26 = vpop.f32.mrf.mxu1  ;;  %v2058_v37 = vld [vmem:[#allocation8 + $0xe8] sm:$0xff] }
 0x111   : > { %v2663_v27 = vadd.f32 %v609_v26, %v2581_v38  ;;  %1547 = vmatpush.bf16.msrb.mxu3 %v2058_v37  ;;  %v2049_v38 = vld [vmem:[#allocation8 + $0xa0] sm:$0xff] }
 0x112   : > { %v684_v28 = vmul.f32 %v2660_v57, %v2660_v57  ;;  %1519 = vmatpush.bf16.msrb.mxu2 %v2049_v38 }
 0x113   : > { %v685_v29 = vmul.f32 %v2663_v27, %v2663_v27 }
 0x115   : > { %v707_v30 = vadd.f32 %v685_v29, %v684_v28  ;;  %1548 = vmatpush.bf16.msrb.mxu3 %v2057_v39 }
 0x116   : > { %1520 = vmatpush.bf16.msrb.mxu2 %v2048_v41 }
 0x117   : > { %708 = vadd.xlane.f32.xlu1 %v707_v30 }
 0x119   : > { %1549 = vmatpush.bf16.msrb.mxu3 %v2056_v43 }
 0x11a   : > { %1521 = vmatpush.bf16.msrb.mxu2 %v2047_v44 }
 0x11d   : > { %1550 = vmatpush.bf16.msrb.mxu3 %v2055_v45 }
 0x11e   : > { %1522 = vmatpush.bf16.msrb.mxu2 %v2046_v46 }
 0x121   : > { %1551 = vmatpush.bf16.msrb.mxu3 %v2054_v48 }
 0x122   : > { %1523 = vmatpush.bf16.msrb.mxu2 %v2045_v52 }
 0x125   : > { %1552 = vmatpush.bf16.msrb.mxu3 %v2053_v53 }
 0x152   : > { %v688_v51 = vpop.xlane.xlu0 %687 }
 0x153   : > { %v710_v54 = vmax.f32 %v688_v51, 1e-24 }
 0x155   : > { %2146 = vrsqrt.f32 %v710_v54  ;;  %vm724_vm1 = vweird.f32 %v710_v54 }
 0x15a   : > { %v691_v58 = vpop.xlane.xlu0 %690 }
 0x15b   : > { %v2147_v60 = vpop.eup %2146  ;;  %v711_v61 = vmax.f32 %v691_v58, 1e-24 }
 0x15c   : > { %v719_v62 = vmul.f32 %v2147_v60, %v710_v54  ;;  %vm725_vm0 = vweird.f32 %v2147_v60 }
 0x15d   : > { %2148 = vrsqrt.f32 %v711_v61  ;;  %vm726_vm2 = vmor %vm724_vm1, %vm725_vm0  ;;  %vm734_vm4 = vweird.f32 %v711_v61 }
 0x15e   : > { %v720_v63 = vmul.f32 %v2147_v60, %v719_v62 }
 0x160   : > { %v721_v0 = vmul.f32 0.5, %v720_v63  ;;  %v2708_v63 = vpop.f32.mrf.mxu2 }
 0x162   : > { %v722_v4 = vsub.f32 1.5, %v721_v0  ;;  %v694_v5 = vpop.xlane.xlu1 %693 }
 0x163   : > { %v2149_v9 = vpop.eup %2148  ;;  %v712_v10 = vmax.f32 %v694_v5, 1e-24 }
 0x164   : > { %v723_v11 = vmul.f32 %v2147_v60, %v722_v4  ;;  %v729_v12 = vmul.f32 %v2149_v9, %v711_v61  ;;  %vm735_vm3 = vweird.f32 %v2149_v9 }
 0x165   : > { %2150 = vrsqrt.f32 %v712_v10  ;;  %vm736_vm5 = vmor %vm734_vm4, %vm735_vm3  ;;  %vm744_vm7 = vweird.f32 %v712_v10 }
 0x166   : > { %v727_v16 = vsel %vm726_vm2, %v2147_v60, %v723_v11  ;;  %v730_v17 = vmul.f32 %v2149_v9, %v729_v12 }
 0x167   : > { %v2681_v18 = vmul.f32 %v727_v16, %v2584_v40  ;;  %v2684_v20 = vmul.f32 %v727_v16, %v2587_v42  ;;  %v2692_v40 = vpop.f32.mrf.mxu3 }
 0x168   : > { %v731_v22 = vmul.f32 0.5, %v730_v17 }
 0x169   : > { %v964_v23 = vmul.f32 %v2676_v13, %v2681_v18  ;;  %v965_v24 = vmul.f32 %v2678_v15, %v2684_v20  ;;  %v1110_v35 = vpack.c.bf16 %v2684_v20, %v2681_v18 }
 0x16a   : > { %v732_v25 = vsub.f32 1.5, %v731_v22  ;;  %v697_v26 = vpop.xlane.xlu1 %696 }
 0x16b   : > { %v2151_v28 = vpop.eup %2150  ;;  %v713_v29 = vmax.f32 %v697_v26, 1e-24  ;;  %v980_v30 = vadd.f32 %v965_v24, %v964_v23  ;;  %v1166_v48 = vunpack.c.l.b16 %v1110_v35  ;;  %v1167_v51 = vunpack.c.h.b16 %v1110_v35 }
 0x16c   : > { %v733_v32 = vmul.f32 %v2149_v9, %v732_v25  ;;  %v739_v42 = vmul.f32 %v2151_v28, %v712_v10  ;;  %vm745_vm6 = vweird.f32 %v2151_v28 }
 0x16d   : > { %2152 = vrsqrt.f32 %v713_v29  ;;  %981 = vadd.xlane.f32.xlu2 %v980_v30  ;;  %vm746_vm8 = vmor %vm744_vm7, %vm745_vm6  ;;  %vm754_vm10 = vweird.f32 %v713_v29 }
 0x16e   : > { %v737_v33 = vsel %vm736_vm5, %v2149_v9, %v733_v32  ;;  %v740_v34 = vmul.f32 %v2151_v28, %v739_v42  ;;  %v2730_v42 = vpop.f32.mrf.mxu2 }
 0x16f   : > { %v2697_v37 = vmul.f32 %v737_v33, %v2594_v47  ;;  %v2700_v38 = vmul.f32 %v737_v33, %v2597_v50  ;;  %v2710_v0 = vpop.f32.mrf.mxu3 }
 0x170   : > { %v741_v39 = vmul.f32 0.5, %v740_v34 }
 0x171   : > { %v966_v41 = vmul.f32 %v2676_v13, %v2697_v37  ;;  %v967_v43 = vmul.f32 %v2678_v15, %v2700_v38  ;;  %v1111_v44 = vpack.c.bf16 %v2700_v38, %v2697_v37 }
 0x172   : > { %v742_v45 = vsub.f32 1.5, %v741_v39  ;;  %v700_v46 = vpop.xlane.xlu2 %699 }
 0x173   : > { %v2153_v47 = vpop.eup %2152  ;;  %v714_v52 = vmax.f32 %v700_v46, 1e-24  ;;  %v983_v53 = vadd.f32 %v967_v43, %v966_v41  ;;  %v1168_v50 = vunpack.c.l.b16 %v1111_v44  ;;  %v1169_v54 = vunpack.c.h.b16 %v1111_v44 }
 0x174   : > { %v743_v58 = vmul.f32 %v2151_v28, %v742_v45  ;;  %v749_v60 = vmul.f32 %v2153_v47, %v713_v29  ;;  %vm755_vm9 = vweird.f32 %v2153_v47 }
 0x175   : > { %2154 = vrsqrt.f32 %v714_v52  ;;  %984 = vadd.xlane.f32.xlu0 %v983_v53  ;;  %v1182_v61 = vpack.c.b16 %v1168_v50, %v1166_v48  ;;  %v1183_v62 = vpack.c.b16 %v1169_v54, %v1167_v51  ;;  %vm756_vm11 = vmor %vm754_vm10, %vm755_vm9  ;;  %vm764_vm13 = vweird.f32 %v714_v52 }
 0x176   : > { %v747_v4 = vsel %vm746_vm8, %v2151_v28, %v743_v58  ;;  %v750_v5 = vmul.f32 %v2153_v47, %v749_v60 }
 0x177   : > { %1524 = vmatmul.bf16.vlgmr.msrb.gmra.mxu2 %v1182_v61  ;;  %1553 = vmatmul.bf16.vlgmr.msrb.gmra.mxu3 %v1183_v62  ;;  %v2713_v7 = vmul.f32 %v747_v4, %v2606_v55  ;;  %v2716_v9 = vmul.f32 %v747_v4, %v2609_v59  ;;  %v2732_v33 = vpop.f32.mrf.mxu3 }
 0x178   : > { %v751_v10 = vmul.f32 0.5, %v750_v5 }
 0x179   : > { %v968_v11 = vmul.f32 %v2676_v13, %v2713_v7  ;;  %v969_v12 = vmul.f32 %v2678_v15, %v2716_v9  ;;  %v1112_v28 = vpack.c.bf16 %v2716_v9, %v2713_v7 }
 0x17a   : > { %v752_v16 = vsub.f32 1.5, %v751_v10  ;;  %v703_v17 = vpop.xlane.xlu2 %702  ;;  %v2753_v10 = vpop.f32.mrf.mxu2 }
 0x17b   : > { %v2155_v22 = vpop.eup %2154  ;;  %v715_v23 = vmax.f32 %v703_v17, 1e-24  ;;  %v986_v24 = vadd.f32 %v969_v12, %v968_v11  ;;  %v1170_v43 = vunpack.c.l.b16 %v1112_v28 }
 0x17c   : > { %v753_v25 = vmul.f32 %v2153_v47, %v752_v16  ;;  %v759_v55 = vmul.f32 %v2155_v22, %v714_v52  ;;  %vm765_vm12 = vweird.f32 %v2155_v22 }
 0x17d   : > { %2156 = vrsqrt.f32 %v715_v23  ;;  %987 = vadd.xlane.f32.xlu1 %v986_v24  ;;  %vm766_vm14 = vmor %vm764_vm13, %vm765_vm12  ;;  %vm774_vm0 = vweird.f32 %v715_v23 }
 0x17e   : > { %v757_v59 = vsel %vm756_vm11, %v2153_v47, %v753_v25  ;;  %v760_v26 = vmul.f32 %v2155_v22, %v759_v55  ;;  %v2762_v55 = vperm.slane %v2573_v36, 3 }
 0x17f   : > { %v2725_v30 = vmul.f32 %v757_v59, %v2616_v49  ;;  %v2728_v32 = vmul.f32 %v757_v59, %v2619_v1  ;;  %v1171_v1 = vunpack.c.h.b16 %v1112_v28  ;;  %v2755_v11 = vpop.f32.mrf.mxu3 }
 0x180   : > { %v761_v29 = vmul.f32 0.5, %v760_v26 }
 0x181   : > { %v970_v34 = vmul.f32 %v2676_v13, %v2725_v30  ;;  %v971_v35 = vmul.f32 %v2678_v15, %v2728_v32  ;;  %v1113_v39 = vpack.c.bf16 %v2728_v32, %v2725_v30 }
 0x182   : > { %v762_v41 = vsub.f32 1.5, %v761_v29  ;;  %v706_v49 = vpop.xlane.xlu0 %705 }
 0x183   : > { %v2157_v44 = vpop.eup %2156  ;;  %v2740_v45 = vmax.f32 %v706_v49, 1e-24  ;;  %v989_v46 = vadd.f32 %v971_v35, %v970_v34  ;;  %v1172_v48 = vunpack.c.l.b16 %v1113_v39  ;;  %v1173_v51 = vunpack.c.h.b16 %v1113_v39 }
 0x184   : > { %v763_v47 = vmul.f32 %v2155_v22, %v762_v41  ;;  %v769_v53 = vmul.f32 %v2157_v44, %v715_v23  ;;  %vm775_vm15 = vweird.f32 %v2157_v44  ;;  %v2778_v35 = vadd.f32 %v2671_v3, %v2762_v55 }
 0x185   : > { %2158 = vrsqrt.f32 %v2740_v45  ;;  %990 = vadd.xlane.f32.xlu2 %v989_v46  ;;  %v1184_v50 = vpack.c.b16 %v1172_v48, %v1170_v43  ;;  %v1185_v54 = vpack.c.b16 %v1173_v51, %v1171_v1  ;;  %vm776_vm1 = vmor %vm774_vm0, %vm775_vm15  ;;  %v2786_v48 = vpop.f32.mrf.mxu2  ;;  %vm784_vm3 = vweird.f32 %v2740_v45 }
 0x186   : > { %v767_v58 = vsel %vm766_vm14, %v2155_v22, %v763_v47  ;;  %v770_v60 = vmul.f32 %v2157_v44, %v769_v53 }
 0x187   : > { %1529 = vmatmul.bf16.gmra.mxu2 %v1184_v50  ;;  %1558 = vmatmul.bf16.gmra.mxu3 %v1185_v54  ;;  %v2744_v61 = vmul.f32 %v767_v58, %v2628_v6  ;;  %v2747_v62 = vmul.f32 %v767_v58, %v2631_v8  ;;  %v2758_v8 = vperm.slane %v2573_v36, 2  ;;  %v2788_v3 = vpop.f32.mrf.mxu3  ;;  %v815_v50 = vmul.f32 %v2778_v35, %v2778_v35 }
 0x188   : > { %v771_v4 = vmul.f32 0.5, %v770_v60 }
 0x189   : > { %v972_v52 = vmul.f32 %v2676_v13, %v2744_v61  ;;  %v973_v5 = vmul.f32 %v2678_v15, %v2747_v62  ;;  %v1114_v28 = vpack.c.bf16 %v2747_v62, %v2744_v61  ;;  %v2774_v23 = vadd.f32 %v2669_v2, %v2758_v8 }
 0x18a   : > { %v772_v12 = vsub.f32 1.5, %v771_v4  ;;  %v709_v16 = vpop.xlane.xlu1 %708 }
 0x18b   : > { %v2159_v17 = vpop.eup %2158  ;;  %v717_v6 = vmax.f32 %v709_v16, 1e-24  ;;  %v992_v22 = vadd.f32 %v973_v5, %v972_v52  ;;  %v1174_v49 = vunpack.c.l.b16 %v1114_v28  ;;  %v814_v53 = vmul.f32 %v2774_v23, %v2774_v23 }
 0x18c   : > { %v773_v24 = vmul.f32 %v2157_v44, %v772_v12  ;;  %v779_v25 = vmul.f32 %v2159_v17, %v2740_v45  ;;  %vm785_vm2 = vweird.f32 %v2159_v17  ;;  %v2803_v12 = vadd.f32 %v2730_v42, %v2758_v8 }
 0x18d   : > { %2160 = vrsqrt.f32 %v717_v6  ;;  %993 = vadd.xlane.f32.xlu0 %v992_v22  ;;  %vm786_vm4 = vmor %vm784_vm3, %vm785_vm2  ;;  %v2807_v16 = vadd.f32 %v2732_v33, %v2762_v55  ;;  %v830_v22 = vadd.f32 %v815_v50, %v814_v53  ;;  %vm794_vm6 = vweird.f32 %v717_v6 }
 0x18e   : > { %v777_v59 = vsel %vm776_vm1, %v2157_v44, %v773_v24  ;;  %v780_v26 = vmul.f32 %v2159_v17, %v779_v25  ;;  %v1175_v44 = vunpack.c.h.b16 %v1114_v28  ;;  %v2819_v24 = vadd.f32 %v2692_v40, %v2762_v55 }
 0x18f   : > { %v2767_v29 = vmul.f32 %v777_v59, %v2638_v56  ;;  %v2770_v34 = vmul.f32 %v777_v59, %v2641_v14  ;;  %v820_v59 = vmul.f32 %v2803_v12, %v2803_v12  ;;  %v665_v28 = vpop.f32.mrf.mxu3 }
 0x190   : > { %v781_v36 = vmul.f32 0.5, %v780_v26  ;;  %v821_v26 = vmul.f32 %v2807_v16, %v2807_v16 }
 0x191   : > { %v974_v39 = vmul.f32 %v2676_v13, %v2767_v29  ;;  %v975_v41 = vmul.f32 %v2678_v15, %v2770_v34  ;;  %v1115_v56 = vpack.c.bf16 %v2770_v34, %v2767_v29 }
 0x192   : > { %v782_v14 = vsub.f32 1.5, %v781_v36  ;;  %v817_v36 = vmul.f32 %v2819_v24, %v2819_v24 }
 0x193   : > { %v2161_v43 = vpop.eup %2160  ;;  %v995_v2 = vadd.f32 %v975_v41, %v974_v39  ;;  %v1176_v1 = vunpack.c.l.b16 %v1115_v56  ;;  %v1177_v46 = vunpack.c.h.b16 %v1115_v56 }
 0x194   : > { %v783_v51 = vmul.f32 %v2159_v17, %v782_v14  ;;  %v789_v47 = vmul.f32 %v2161_v43, %v717_v6  ;;  %vm795_vm5 = vweird.f32 %v2161_v43  ;;  %v2839_v14 = vadd.f32 %v2708_v63, %v2758_v8 }
 0x195   : > { %996 = vadd.xlane.f32.xlu1 %v995_v2  ;;  %v1186_v54 = vpack.c.b16 %v1176_v1, %v1174_v49  ;;  %v1187_v58 = vpack.c.b16 %v1177_v46, %v1175_v44  ;;  %vm796_vm7 = vmor %vm794_vm6, %vm795_vm5  ;;  %v2843_v49 = vadd.f32 %v2710_v0, %v2762_v55  ;;  %v839_v2 = vadd.f32 %v821_v26, %v820_v59 }
 0x196   : > { %v787_v60 = vsel %vm786_vm4, %v2159_v17, %v783_v51  ;;  %v790_v4 = vmul.f32 %v2161_v43, %v789_v47  ;;  %v2859_v0 = vadd.f32 %v2753_v10, %v2758_v8  ;;  %v2863_v44 = vadd.f32 %v2755_v11, %v2762_v55 }
 0x197   : > { %1534 = vmatmul.bf16.gmra.mxu2 %v1186_v54  ;;  %1563 = vmatmul.bf16.gmra.mxu3 %v1187_v58  ;;  %v2796_v52 = vmul.f32 %v787_v60, %v2650_v19  ;;  %v2799_v45 = vmul.f32 %v787_v60, %v2653_v21  ;;  %v2815_v21 = vadd.f32 %v2690_v31, %v2758_v8  ;;  %v636_v31 = vpop.f32.mrf.mxu2 }
 0x198   : > { %v791_v5 = vmul.f32 0.5, %v790_v4  ;;  %v818_v50 = vmul.f32 %v2839_v14, %v2839_v14  ;;  %v819_v54 = vmul.f32 %v2843_v49, %v2843_v49  ;;  %v822_v4 = vmul.f32 %v2859_v0, %v2859_v0 }
 0x199   : > { %v976_v17 = vmul.f32 %v2676_v13, %v2796_v52  ;;  %v977_v19 = vmul.f32 %v2678_v15, %v2799_v45  ;;  %v816_v40 = vmul.f32 %v2815_v21, %v2815_v21  ;;  %v1116_v6 = vpack.c.bf16 %v2799_v45, %v2796_v52 }
 0x19a   : > { %v792_v42 = vsub.f32 1.5, %v791_v5  ;;  %v823_v5 = vmul.f32 %v2863_v44, %v2863_v44 }
 0x19b   : > { %v998_v25 = vadd.f32 %v977_v19, %v976_v17  ;;  %v833_v46 = vadd.f32 %v817_v36, %v816_v40  ;;  %v1178_v51 = vunpack.c.l.b16 %v1116_v6  ;;  %v1179_v53 = vunpack.c.h.b16 %v1116_v6  ;;  %v667_v17 = vpop.f32.mrf.mxu3 }
 0x19c   : > { %v793_v33 = vmul.f32 %v2161_v43, %v792_v42  ;;  %v2879_v19 = vadd.f32 %v2786_v48, %v2758_v8  ;;  %v2883_v42 = vadd.f32 %v2788_v3, %v2762_v55  ;;  %v842_v59 = vadd.f32 %v823_v5, %v822_v4 }
 0x19d   : > { %831 = vadd.xlane.f32.xlu1 %v830_v22  ;;  %999 = vadd.xlane.f32.xlu2 %v998_v25 }
 0x19e   : > { %v797_v39 = vsel %vm796_vm7, %v2161_v43, %v793_v33  ;;  %v2846_v43 = vadd.f32 %v636_v31, %v2758_v8  ;;  %v836_v33 = vadd.f32 %v819_v54, %v818_v50  ;;  %v2889_v31 = vadd.f32 %v667_v17, %v2762_v55 }
 0x19f   : > { %v2832_v41 = vmul.f32 %v797_v39, %v2660_v57  ;;  %v2835_v56 = vmul.f32 %v797_v39, %v2663_v27  ;;  %v2853_v27 = vadd.f32 %v665_v28, %v2762_v55  ;;  %v638_v22 = vpop.f32.mrf.mxu2  ;;  %v824_v28 = vmul.f32 %v2879_v19, %v2879_v19 }
 0x1a0   : > { %v826_v10 = vmul.f32 %v2846_v43, %v2846_v43  ;;  %v2886_v26 = vadd.f32 %v638_v22, %v2758_v8  ;;  %v825_v48 = vmul.f32 %v2883_v42, %v2883_v42  ;;  %v829_v40 = vmul.f32 %v2889_v31, %v2889_v31 }
 0x1a1   : > { %v978_v1 = vmul.f32 %v2676_v13, %v2832_v41  ;;  %v979_v57 = vmul.f32 %v2678_v15, %v2835_v56  ;;  %v1117_v63 = vpack.c.bf16 %v2835_v56, %v2832_v41  ;;  %v827_v11 = vmul.f32 %v2853_v27, %v2853_v27 }
 0x1a2   : > { %v828_v3 = vmul.f32 %v2886_v26, %v2886_v26  ;;  %v845_v8 = vadd.f32 %v825_v48, %v824_v28 }
 0x1a3   : > { %v1001_v13 = vadd.f32 %v979_v57, %v978_v1  ;;  %v1180_v47 = vunpack.c.l.b16 %v1117_v63  ;;  %v1181_v15 = vunpack.c.h.b16 %v1117_v63  ;;  %v848_v25 = vadd.f32 %v827_v11, %v826_v10 }
 0x1a4   : > { %v851_v36 = vadd.f32 %v829_v40, %v828_v3  ;;  %v2036_v3 = vld [vmem:[#allocation8 + $0x38] sm:$0xff] }
 0x1a5   : > { %840 = vadd.xlane.f32.xlu1 %v839_v2  ;;  %1002 = vadd.xlane.f32.xlu0 %v1001_v13  ;;  %v1188_v58 = vpack.c.b16 %v1180_v47, %v1178_v51  ;;  %v1189_v60 = vpack.c.b16 %v1181_v15, %v1179_v53  ;;  %v2044_v40 = vld [vmem:[#allocation8 + $0x78] sm:$0xff] }
 0x1a6   : > { %834 = vadd.xlane.f32.xlu2 %v833_v46  ;;  %1458 = vmatpush.bf16.msrb.mxu0 %v2036_v3 }
 0x1a7   : > { %1539 = vmatmul.bf16.gmra.mxu2 %v1188_v58  ;;  %1568 = vmatmul.bf16.gmra.mxu3 %v1189_v60 }
 0x1a8   : > { %1487 = vmatpush.bf16.msrb.mxu1 %v2044_v40 }
 0x1ad   : > { %849 = vadd.xlane.f32.xlu1 %v848_v25  ;;  %837 = vadd.xlane.f32.xlu0 %v836_v33 }
 0x1ae   : > { %843 = vadd.xlane.f32.xlu2 %v842_v59 }
 0x1b5   : > { %846 = vadd.xlane.f32.xlu0 %v845_v8 }
 0x1b6   : > { %852 = vadd.xlane.f32.xlu2 %v851_v36 }
 0x1e0   : > { %v2899_v55 = vpop.xlane.xlu2 %981 }
 0x1e1   : > { %v1004_v57 = vmul.f32 %v2899_v55, %v2899_v55 }
 0x1e8   : > { %v2901_v39 = vpop.xlane.xlu0 %984 }
 0x1e9   : > { %v1005_v1 = vmul.f32 %v2901_v39, %v2901_v39 }
 0x1eb   : > { %v1012_v51 = vadd.f32 %v1005_v1, %v1004_v57 }
 0x1f0   : > { %v2903_v6 = vpop.xlane.xlu1 %987 }
 0x1f1   : > { %v1006_v63 = vmul.f32 %v2903_v6, %v2903_v6 }
 0x1f3   : > { %v1013_v53 = vadd.f32 %v1012_v51, %v1006_v63  ;;  %v2035_v63 = vld [vmem:[#allocation8 + $0x30] sm:$0xff] }
 0x1f4   : > { %v2043_v51 = vld [vmem:[#allocation8 + $0x70] sm:$0xff]  ;;  %1459 = vmatpush.bf16.msrb.mxu0 %v2035_v63 }
 0x1f5   : > { %1488 = vmatpush.bf16.msrb.mxu1 %v2043_v51 }
 0x1f8   : > { %v2905_v2 = vpop.xlane.xlu2 %990 }
 0x1f9   : > { %v1007_v13 = vmul.f32 %v2905_v2, %v2905_v2 }
 0x1fb   : > { %v1014_v54 = vadd.f32 %v1013_v53, %v1007_v13 }
 0x200   : > { %v2913_v46 = vpop.xlane.xlu0 %993 }
 0x201   : > { %v1008_v15 = vmul.f32 %v2913_v46, %v2913_v46 }
 0x203   : > { %v1015_v11 = vadd.f32 %v1014_v54, %v1008_v15 }
 0x208   : > { %v2917_v47 = vpop.xlane.xlu1 %996 }
 0x209   : > { %v1009_v10 = vmul.f32 %v2917_v47, %v2917_v47 }
 0x20b   : > { %v1016_v60 = vadd.f32 %v1015_v11, %v1009_v10  ;;  %v2034_v10 = vld [vmem:[#allocation8 + $0x28] sm:$0xff] }
 0x20c   : > { %v2042_v11 = vld [vmem:[#allocation8 + $0x68] sm:$0xff]  ;;  %1460 = vmatpush.bf16.msrb.mxu0 %v2034_v10 }
 0x20d   : > { %1489 = vmatpush.bf16.msrb.mxu1 %v2042_v11 }
 0x210   : > { %v2921_v50 = vpop.xlane.xlu2 %999  ;;  %v832_v57 = vpop.xlane.xlu1 %831 }
 0x211   : > { %v1010_v58 = vmul.f32 %v2921_v50, %v2921_v50  ;;  %v2931_v54 = vmax.f32 %v832_v57, 1e-24 }
 0x213   : > { %v1017_v5 = vadd.f32 %v1016_v60, %v1010_v58  ;;  %vm868_vm11 = vweird.f32 %v2931_v54 }
 0x218   : > { %v2927_v4 = vpop.xlane.xlu0 %1002 }
 0x219   : > { %v1011_v22 = vmul.f32 %v2927_v4, %v2927_v4  ;;  %v835_v53 = vpop.xlane.xlu2 %834 }
 0x21a   : > { %v2933_v60 = vmax.f32 %v835_v53, 1e-24 }
 0x21b   : > { %v1018_v17 = vadd.f32 %v1017_v5, %v1011_v22  ;;  %v2033_v22 = vld [vmem:[#allocation8 + $0x20] sm:$0xff] }
 0x21c   : > { %1461 = vmatpush.bf16.msrb.mxu0 %v2033_v22  ;;  %vm878_vm13 = vweird.f32 %v2933_v60 }
 0x21d   : > { %v1019_v25 = vrot.slane %v1018_v17, 4 }
 0x21f   : > { %v1020_v33 = vadd.f32 %v1019_v25, %v1018_v17  ;;  %v2041_v17 = vld [vmem:[#allocation8 + $0x60] sm:$0xff] }
 0x220   : > { %1490 = vmatpush.bf16.msrb.mxu1 %v2041_v17  ;;  %v2038_v17 = vld [vmem:[#allocation8 + $0x48] sm:$0xff] }
 0x221   : > { %v1021_v59 = vrot.slane %v1020_v33, 2 }
 0x223   : > { %v1022_v28 = vadd.f32 %v1021_v59, %v1020_v33  ;;  %v841_v33 = vpop.xlane.xlu1 %840  ;;  %v2032_v59 = vld [vmem:[#allocation8 + $0x18] sm:$0xff] }
 0x224   : > { %v2939_v57 = vmax.f32 %v841_v33, 1e-24  ;;  %1462 = vmatpush.bf16.msrb.mxu0 %v2032_v59 }
 0x225   : > { %v1023_v48 = vrot.slane %v1022_v28, 1 }
 0x226   : > { %vm898_vm1 = vweird.f32 %v2939_v57 }
 0x227   : > { %v1024_v8 = vadd.f32 %v1023_v48, %v1022_v28  ;;  %v2040_v48 = vld [vmem:[#allocation8 + $0x58] sm:$0xff] }
 0x228   : > { %1491 = vmatpush.bf16.msrb.mxu1 %v2040_v48 }
 0x229   : > { %v1025_v36 = vmax.f32 %v1024_v8, 1e-24  ;;  %v838_v8 = vpop.xlane.xlu0 %837 }
 0x22b   : > { %2162 = vrsqrt.f32 %v1025_v36  ;;  %vm1032_vm9 = vweird.f32 %v1025_v36 }
 0x22c   : > { %2164 = vrsqrt.f32 %v2931_v54 }
 0x22d   : > { %2166 = vrsqrt.f32 %v2933_v60 }
 0x22e   : > { %2168 = vrsqrt.f32 %v2939_v57 }
 0x231   : > { %v2163_v1 = vpop.eup %2162 }
 0x232   : > { %v1027_v13 = vmul.f32 %v2163_v1, %v1025_v36  ;;  %vm1033_vm8 = vweird.f32 %v2163_v1  ;;  %v2942_v51 = vpop.eup %2164 }
 0x233   : > { %vm1034_vm10 = vmor %vm1032_vm9, %vm1033_vm8  ;;  %v2950_v10 = vpop.eup %2166  ;;  %v863_v11 = vmul.f32 %v2942_v51, %v2931_v54  ;;  %vm869_vm12 = vweird.f32 %v2942_v51 }
 0x234   : > { %v1028_v15 = vmul.f32 %v2163_v1, %v1027_v13  ;;  %v873_v22 = vmul.f32 %v2950_v10, %v2933_v60  ;;  %vm879_vm14 = vweird.f32 %v2950_v10  ;;  %vm870_vm15 = vmor %vm868_vm11, %vm869_vm12 }
 0x235   : > { %vm880_vm0 = vmor %vm878_vm13, %vm879_vm14 }
 0x236   : > { %v1029_v58 = vmul.f32 0.5, %v1028_v15  ;;  %v2031_v15 = vld [vmem:[#allocation8 + $0x10] sm:$0xff] }
 0x237   : > { %1463 = vmatpush.bf16.msrb.mxu0 %v2031_v15 }
 0x238   : > { %v1030_v5 = vsub.f32 1.5, %v1029_v58 }
 0x23a   : > { %v1031_v25 = vmul.f32 %v2163_v1, %v1030_v5  ;;  %v2030_v5 = vld [vmem:[#allocation8 + $0x8] sm:$0xff] }
 0x23b   : > { %1464 = vmatpush.bf16.msrb.mxu0 %v2030_v5 }
 0x23c   : > { %v1035_v28 = vsel %vm1034_vm10, %v2163_v1, %v1031_v25 }
 0x23d   : > { %v1036_v3 = vmul.f32 %v1035_v28, %v2899_v55  ;;  %v1037_v40 = vmul.f32 %v1035_v28, %v2901_v39  ;;  %v1038_v63 = vmul.f32 %v1035_v28, %v2903_v6  ;;  %v2948_v55 = vmax.f32 %v838_v8, 1e-24  ;;  %v2039_v39 = vld [vmem:[#allocation8 + $0x50] sm:$0xff]  ;;  %v2029_v8 = vld [vmem:[#allocation8] sm:$0xff] }
 0x23e   : > { %v1039_v6 = vmul.f32 %v1035_v28, %v2905_v2  ;;  %v1041_v2 = vmul.f32 %v1035_v28, %v2917_v47  ;;  %1492 = vmatpush.bf16.msrb.mxu1 %v2039_v39  ;;  %v1042_v59 = vmul.f32 %v1035_v28, %v2921_v50 }
 0x23f   : > { %v1044_v36 = vmul.f32 %v1036_v3, %v2681_v18  ;;  %v1045_v13 = vmul.f32 %v1036_v3, %v2684_v20  ;;  %v1046_v53 = vmul.f32 %v1037_v40, %v2697_v37  ;;  %v1047_v1 = vmul.f32 %v1037_v40, %v2700_v38  ;;  %1465 = vmatpush.bf16.msrb.mxu0 %v2029_v8 }
 0x240   : > { %v1040_v18 = vmul.f32 %v1035_v28, %v2913_v46  ;;  %v1048_v20 = vmul.f32 %v1038_v63, %v2713_v7  ;;  %v1049_v37 = vmul.f32 %v1038_v63, %v2716_v9  ;;  %2170 = vrsqrt.f32 %v2948_v55  ;;  %v2969_v63 = vpop.eup %2168 }
 0x241   : > { %v1060_v38 = vadd.f32 %v1046_v53, %v1044_v36  ;;  %v1073_v58 = vadd.f32 %v1047_v1, %v1045_v13  ;;  %v1050_v25 = vmul.f32 %v1039_v6, %v2725_v30  ;;  %v1051_v46 = vmul.f32 %v1039_v6, %v2728_v32  ;;  %v2037_v36 = vld [vmem:[#allocation8 + $0x40] sm:$0xff] }
 0x242   : > { %v864_v9 = vmul.f32 %v2942_v51, %v863_v11  ;;  %v1052_v48 = vmul.f32 %v1040_v18, %v2744_v61  ;;  %v1053_v3 = vmul.f32 %v1040_v18, %v2747_v62  ;;  %v874_v30 = vmul.f32 %v2950_v10, %v873_v22  ;;  %1493 = vmatpush.bf16.msrb.mxu1 %v2038_v17  ;;  %v844_v18 = vpop.xlane.xlu2 %843 }
 0x243   : > { %v1061_v7 = vadd.f32 %v1060_v38, %v1048_v20  ;;  %v1074_v33 = vadd.f32 %v1073_v58, %v1049_v37  ;;  %v1043_v32 = vmul.f32 %v1035_v28, %v2927_v4  ;;  %v1054_v13 = vmul.f32 %v1041_v2, %v2767_v29  ;;  %v847_v38 = vpop.xlane.xlu0 %846 }
 0x244   : > { %v1055_v50 = vmul.f32 %v1041_v2, %v2770_v34  ;;  %v865_v62 = vmul.f32 0.5, %v864_v9  ;;  %v1056_v15 = vmul.f32 %v1042_v59, %v2796_v52  ;;  %v1057_v39 = vmul.f32 %v1042_v59, %v2799_v45 }
 0x245   : > { %v1062_v40 = vadd.f32 %v1061_v7, %v1050_v25  ;;  %v1075_v47 = vadd.f32 %v1074_v33, %v1051_v46  ;;  %v893_v4 = vmul.f32 %v2969_v63, %v2939_v57  ;;  %v875_v28 = vmul.f32 0.5, %v874_v30 }
 0x246   : > { %v2975_v1 = vpop.eup %2170  ;;  %1494 = vmatpush.bf16.msrb.mxu1 %v2037_v36  ;;  %v1058_v29 = vmul.f32 %v1043_v32, %v2832_v41  ;;  %v1059_v34 = vmul.f32 %v1043_v32, %v2835_v56  ;;  %v866_v45 = vsub.f32 1.5, %v865_v62  ;;  %v2985_v22 = vmax.f32 %v844_v18, 1e-24 }
 0x247   : > { %v1063_v53 = vadd.f32 %v1062_v40, %v1052_v48  ;;  %v1076_v61 = vadd.f32 %v1075_v47, %v1053_v3  ;;  %v883_v52 = vmul.f32 %v2975_v1, %v2948_v55  ;;  %v894_v2 = vmul.f32 %v2969_v63, %v893_v4  ;;  %v850_v4 = vpop.xlane.xlu1 %849 }
 0x248   : > { %v876_v17 = vsub.f32 1.5, %v875_v28  ;;  %v2990_v25 = vmax.f32 %v847_v38, 1e-24  ;;  %v867_v7 = vmul.f32 %v2942_v51, %v866_v45  ;;  %2172 = vrsqrt.f32 %v2985_v22 }
 0x249   : > { %v1064_v6 = vadd.f32 %v1063_v53, %v1054_v13  ;;  %v1077_v11 = vadd.f32 %v1076_v61, %v1055_v50  ;;  %v884_v46 = vmul.f32 %v2975_v1, %v883_v52  ;;  %v895_v54 = vmul.f32 0.5, %v894_v2 }
 0x24a   : > { %v877_v59 = vmul.f32 %v2950_v10, %v876_v17  ;;  %2174 = vrsqrt.f32 %v2990_v25  ;;  %v871_v40 = vsel %vm870_vm15, %v2942_v51, %v867_v7  ;;  %vm899_vm2 = vweird.f32 %v2969_v63 }
 0x24b   : > { %v1065_v20 = vadd.f32 %v1064_v6, %v1056_v15  ;;  %v1078_v37 = vadd.f32 %v1077_v11, %v1057_v39  ;;  %v885_v60 = vmul.f32 0.5, %v884_v46  ;;  %v896_v30 = vsub.f32 1.5, %v895_v54  ;;  %vm900_vm5 = vmor %vm898_vm1, %vm899_vm2 }
 0x24c   : > { %v881_v32 = vsel %vm880_vm0, %v2950_v10, %v877_v59  ;;  %v942_v53 = vmul.f32 %v871_v40, %v2774_v23  ;;  %v943_v61 = vmul.f32 %v871_v40, %v2778_v35  ;;  %vm888_vm3 = vweird.f32 %v2948_v55  ;;  %v853_v35 = vpop.xlane.xlu2 %852 }
 0x24d   : > { %v1066_v58 = vadd.f32 %v1065_v20, %v1058_v29  ;;  %v1079_v5 = vadd.f32 %v1078_v37, %v1059_v34  ;;  %v886_v62 = vsub.f32 1.5, %v885_v60  ;;  %v944_v51 = vmul.f32 %v881_v32, %v2815_v21 }
 0x24e   : > { %v3001_v36 = vpop.eup %2172  ;;  %v945_v39 = vmul.f32 %v881_v32, %v2819_v24  ;;  %v897_v11 = vmul.f32 %v2969_v63, %v896_v30  ;;  %vm889_vm4 = vweird.f32 %v2975_v1  ;;  %v3029_v55 = vmax.f32 %v850_v4, 1e-24 }
 0x24f   : > { %v1067_v41 = vrot.slane %v1066_v58, 4  ;;  %v1080_v56 = vrot.slane %v1079_v5, 4  ;;  %v903_v23 = vmul.f32 %v3001_v36, %v2985_v22  ;;  %v887_v29 = vmul.f32 %v2975_v1, %v886_v62  ;;  %vm890_vm6 = vmor %vm888_vm3, %vm889_vm4 }
 0x250   : > { %v3007_v15 = vpop.eup %2174  ;;  %v901_v37 = vsel %vm900_vm5, %v2969_v63, %v897_v11  ;;  %v3033_v38 = vmax.f32 %v853_v35, 1e-24  ;;  %2176 = vrsqrt.f32 %v3029_v55  ;;  %vm908_vm7 = vweird.f32 %v2985_v22 }
 0x251   : > { %v1068_v33 = vadd.f32 %v1067_v41, %v1066_v58  ;;  %v1081_v9 = vadd.f32 %v1080_v56, %v1079_v5  ;;  %v913_v34 = vmul.f32 %v3007_v15, %v2990_v25  ;;  %v904_v52 = vmul.f32 %v3001_v36, %v903_v23 }
 0x252   : > { %v891_v17 = vsel %vm890_vm6, %v2975_v1, %v887_v29  ;;  %v948_v7 = vmul.f32 %v901_v37, %v2803_v12  ;;  %2178 = vrsqrt.f32 %v3033_v38  ;;  %v949_v63 = vmul.f32 %v901_v37, %v2807_v16 }
 0x253   : > { %v1069_v48 = vrot.slane %v1068_v33, 2  ;;  %v1082_v3 = vrot.slane %v1081_v9, 2  ;;  %v914_v41 = vmul.f32 %v3007_v15, %v913_v34  ;;  %v947_v54 = vmul.f32 %v891_v17, %v2843_v49 }
 0x254   : > { %vm909_vm8 = vweird.f32 %v3001_v36  ;;  %vm918_vm9 = vweird.f32 %v2990_v25  ;;  %vm919_vm10 = vweird.f32 %v3007_v15  ;;  %vm928_vm13 = vweird.f32 %v3029_v55 }
 0x255   : > { %v1070_v47 = vadd.f32 %v1069_v48, %v1068_v33  ;;  %v1083_v8 = vadd.f32 %v1082_v3, %v1081_v9  ;;  %v905_v33 = vmul.f32 0.5, %v904_v52  ;;  %v946_v9 = vmul.f32 %v891_v17, %v2839_v14  ;;  %vm910_vm11 = vmor %vm908_vm7, %vm909_vm8 }
 0x256   : > { %v915_v1 = vmul.f32 0.5, %v914_v41  ;;  %v2177_v60 = vpop.eup %2176  ;;  %vm920_vm12 = vmor %vm918_vm9, %vm919_vm10  ;;  %vm938_vm15 = vweird.f32 %v3033_v38 }
 0x257   : > { %v1071_v13 = vrot.slane %v1070_v47, 1  ;;  %v1084_v50 = vrot.slane %v1083_v8, 1  ;;  %v906_v40 = vsub.f32 1.5, %v905_v33  ;;  %vm929_vm14 = vweird.f32 %v2177_v60 }
 0x258   : > { %v916_v16 = vsub.f32 1.5, %v915_v1  ;;  %vm930_vm1 = vmor %vm928_vm13, %vm929_vm14 }
 0x259   : > { %v3011_v10 = vadd.f32 %v1071_v13, %v1070_v47  ;;  %v3013_v6 = vadd.f32 %v1084_v50, %v1083_v8  ;;  %v2179_v47 = vpop.eup %2178  ;;  %v923_v8 = vmul.f32 %v2177_v60, %v3029_v55  ;;  %v907_v30 = vmul.f32 %v3001_v36, %v906_v40 }
 0x25a   : > { %v933_v32 = vmul.f32 %v2179_v47, %v3033_v38  ;;  %v917_v13 = vmul.f32 %v3007_v15, %v916_v16  ;;  %vm939_vm0 = vweird.f32 %v2179_v47 }
 0x25b   : > { %v1086_v21 = vmul.f32 %v3011_v10, %v942_v53  ;;  %v1087_v24 = vmul.f32 %v3013_v6, %v943_v61  ;;  %v1088_v28 = vmul.f32 %v3011_v10, %v944_v51  ;;  %v1089_v18 = vmul.f32 %v3013_v6, %v945_v39  ;;  %vm940_vm2 = vmor %vm938_vm15, %vm939_vm0 }
 0x25c   : > { %v1090_v59 = vmul.f32 %v3011_v10, %v946_v9  ;;  %v1091_v48 = vmul.f32 %v3013_v6, %v947_v54  ;;  %v1092_v3 = vmul.f32 %v3011_v10, %v948_v7  ;;  %v1093_v12 = vmul.f32 %v3013_v6, %v949_v63 }
 0x25d   : > { %v1102_v20 = vpack.c.bf16 %v1087_v24, %v1086_v21  ;;  %v1103_v57 = vpack.c.bf16 %v1089_v18, %v1088_v28  ;;  %v924_v62 = vmul.f32 %v2177_v60, %v923_v8  ;;  %v911_v51 = vsel %vm910_vm11, %v3001_v36, %v907_v30 }
 0x25e   : > { %v1104_v14 = vpack.c.bf16 %v1091_v48, %v1090_v59  ;;  %v1105_v49 = vpack.c.bf16 %v1093_v12, %v1092_v3  ;;  %v934_v25 = vmul.f32 %v2179_v47, %v933_v32  ;;  %v921_v39 = vsel %vm920_vm12, %v3007_v15, %v917_v13  ;;  %v1554_v12 = vpop.f32.mrf.mxu3 }
 0x25f   : > { %v1126_v45 = vunpack.c.l.b16 %v1102_v20  ;;  %v1128_v58 = vunpack.c.l.b16 %v1103_v57  ;;  %v1127_v5 = vunpack.c.h.b16 %v1102_v20  ;;  %v1129_v2 = vunpack.c.h.b16 %v1103_v57 }
 0x260   : > { %v1130_v50 = vunpack.c.l.b16 %v1104_v14  ;;  %v1132_v22 = vunpack.c.l.b16 %v1105_v49  ;;  %v1131_v53 = vunpack.c.h.b16 %v1104_v14  ;;  %v1133_v61 = vunpack.c.h.b16 %v1105_v49 }
 0x261   : > { %v1142_v56 = vpack.c.b16 %v1128_v58, %v1126_v45  ;;  %v1143_v46 = vpack.c.b16 %v1129_v2, %v1127_v5  ;;  %v950_v23 = vmul.f32 %v911_v51, %v2859_v0  ;;  %v925_v35 = vmul.f32 0.5, %v924_v62 }
 0x262   : > { %v1144_v11 = vpack.c.b16 %v1132_v22, %v1130_v50  ;;  %v1145_v4 = vpack.c.b16 %v1133_v61, %v1131_v53  ;;  %v951_v21 = vmul.f32 %v911_v51, %v2863_v44  ;;  %v952_v24 = vmul.f32 %v921_v39, %v2879_v19 }
 0x263   : > { %1466 = vmatmul.bf16.vlgmr.msrb.gmra.mxu0 %v1142_v56  ;;  %1495 = vmatmul.bf16.vlgmr.msrb.gmra.mxu1 %v1143_v46  ;;  %v953_v28 = vmul.f32 %v921_v39, %v2883_v42  ;;  %v935_v18 = vmul.f32 0.5, %v934_v25  ;;  %v1094_v29 = vmul.f32 %v3011_v10, %v950_v23  ;;  %v926_v20 = vsub.f32 1.5, %v925_v35 }
 0x264   : > { %v1095_v36 = vmul.f32 %v3013_v6, %v951_v21  ;;  %v1096_v15 = vmul.f32 %v3011_v10, %v952_v24 }
 0x265   : > { %v1097_v34 = vmul.f32 %v3013_v6, %v953_v28  ;;  %v936_v0 = vsub.f32 1.5, %v935_v18  ;;  %v927_v42 = vmul.f32 %v2177_v60, %v926_v20 }
 0x266   : > { %v1106_v44 = vpack.c.bf16 %v1095_v36, %v1094_v29 }
 0x267   : > { %v1107_v19 = vpack.c.bf16 %v1097_v34, %v1096_v15  ;;  %v937_v57 = vmul.f32 %v2179_v47, %v936_v0  ;;  %v931_v5 = vsel %vm930_vm1, %v2177_v60, %v927_v42  ;;  %v3078_v60 = vld [vmem:[%s3138_s5] ss:$0 sm:$0xff] }
 0x268   : > { %v1134_v37 = vunpack.c.l.b16 %v1106_v44  ;;  %v1135_v45 = vunpack.c.h.b16 %v1106_v44  ;;  %v954_v55 = vmul.f32 %v931_v5, %v2846_v43  ;;  %v955_v56 = vmul.f32 %v931_v5, %v2853_v27 }
 0x269   : > { %v1136_v52 = vunpack.c.l.b16 %v1107_v19  ;;  %v1137_v58 = vunpack.c.h.b16 %v1107_v19  ;;  %v941_v2 = vsel %vm940_vm2, %v2179_v47, %v937_v57  ;;  %v1556_v47 = vpop.f32.mrf.mxu3 }
 0x26a   : > { %v956_v46 = vmul.f32 %v941_v2, %v2886_v26  ;;  %v957_v38 = vmul.f32 %v941_v2, %v2889_v31  ;;  %v1098_v7 = vmul.f32 %v3011_v10, %v954_v55  ;;  %v1099_v63 = vmul.f32 %v3013_v6, %v955_v56  ;;  %v1525_v31 = vpop.f32.mrf.mxu2 }
 0x26b   : > { %v1146_v17 = vpack.c.b16 %v1136_v52, %v1134_v37  ;;  %v1147_v41 = vpack.c.b16 %v1137_v58, %v1135_v45 }
 0x26c   : > { %v1100_v33 = vmul.f32 %v3011_v10, %v956_v46  ;;  %v1101_v9 = vmul.f32 %v3013_v6, %v957_v38  ;;  %v1108_v54 = vpack.c.bf16 %v1099_v63, %v1098_v7 }
 0x26e   : > { %v1109_v1 = vpack.c.bf16 %v1101_v9, %v1100_v33  ;;  %v1138_v59 = vunpack.c.l.b16 %v1108_v54  ;;  %v1139_v27 = vunpack.c.h.b16 %v1108_v54 }
 0x270   : > { %v1140_v43 = vunpack.c.l.b16 %v1109_v1  ;;  %v1141_v48 = vunpack.c.h.b16 %v1109_v1 }
 0x271   : > { %v1559_v22 = vpop.f32.mrf.mxu3 }
 0x272   : > { %v1148_v26 = vpack.c.b16 %v1140_v43, %v1138_v59  ;;  %v1149_v3 = vpack.c.b16 %v1141_v48, %v1139_v27  ;;  %v1527_v10 = vpop.f32.mrf.mxu2 }
 0x273   : > { %1471 = vmatmul.bf16.gmra.mxu0 %v1144_v11  ;;  %1500 = vmatmul.bf16.gmra.mxu1 %v1145_v4 }
 0x279   : > { %v1561_v23 = vpop.f32.mrf.mxu3 }
 0x27a   : > { %v1530_v13 = vpop.f32.mrf.mxu2 }
 0x281   : > { %v1564_v34 = vpop.f32.mrf.mxu3 }
 0x282   : > { %v1532_v11 = vpop.f32.mrf.mxu2 }
 0x283   : > { %1476 = vmatmul.bf16.gmra.mxu0 %v1146_v17  ;;  %1505 = vmatmul.bf16.gmra.mxu1 %v1147_v41 }
 0x289   : > { %v1566_v2 = vpop.f32.mrf.mxu3 }
 0x28a   : > { %v1535_v36 = vpop.f32.mrf.mxu2 }
 0x291   : > { %v1569_v33 = vpop.f32.mrf.mxu3 }
 0x292   : > { %v1537_v37 = vpop.f32.mrf.mxu2 }
 0x293   : > { %1481 = vmatmul.bf16.gmra.mxu0 %v1148_v26  ;;  %1510 = vmatmul.bf16.gmra.mxu1 %v1149_v3 }
 0x299   : > { %v1571_v3 = vpop.f32.mrf.mxu3 }
 0x29a   : > { %v1540_v7 = vpop.f32.mrf.mxu2 }
 0x2a2   : > { %v1542_v48 = vpop.f32.mrf.mxu2 }
 0x2e0   : > { %v1467_v6 = vpop.f32.mrf.mxu0  ;;  %v1496_v40 = vpop.f32.mrf.mxu1 }
 0x2e1   : > { %v1468_v16 = vadd.f32 %v3078_v60, %v1467_v6 }
 0x2e3   : > { %v1497_v14 = vadd.f32 %v1496_v40, %v1468_v16 }
 0x2e5   : > { %v1526_v49 = vadd.f32 %v1525_v31, %v1497_v14 }
 0x2e7   : > { %v1555_v8 = vadd.f32 %v1554_v12, %v1526_v49 }
 0x2e8   : > { %v1469_v30 = vpop.f32.mrf.mxu0  ;;  %v1498_v32 = vpop.f32.mrf.mxu1 }
 0x2e9   : > { %1574 = vst [vmem:[%s3082_s13] sm:$0xff] %v1555_v8  ;;  %v1470_v50 = vadd.f32 %v3078_v60, %v1469_v30 }
 0x2eb   : > { %v1499_v53 = vadd.f32 %v1498_v32, %v1470_v50 }
 0x2ed   : > { %v1528_v61 = vadd.f32 %v1527_v10, %v1499_v53 }
 0x2ef   : > { %v1557_v62 = vadd.f32 %v1556_v47, %v1528_v61 }
 0x2f0   : > { %v1472_v51 = vpop.f32.mrf.mxu0  ;;  %v1501_v25 = vpop.f32.mrf.mxu1 }
 0x2f1   : > { %1575 = vst [vmem:[%s3082_s13 + $0x8] sm:$0xff] %v1557_v62  ;;  %v1473_v39 = vadd.f32 %v3078_v60, %v1472_v51 }
 0x2f3   : > { %v1502_v4 = vadd.f32 %v1501_v25, %v1473_v39 }
 0x2f5   : > { %v1531_v35 = vadd.f32 %v1530_v13, %v1502_v4 }
 0x2f7   : > { %v1560_v21 = vadd.f32 %v1559_v22, %v1531_v35 }
 0x2f8   : > { %v1474_v24 = vpop.f32.mrf.mxu0  ;;  %v1503_v28 = vpop.f32.mrf.mxu1 }
 0x2f9   : > { %1576 = vst [vmem:[%s3082_s13 + $0x10] sm:$0xff] %v1560_v21  ;;  %v1475_v18 = vadd.f32 %v3078_v60, %v1474_v24 }
 0x2fb   : > { %v1504_v29 = vadd.f32 %v1503_v28, %v1475_v18 }
 0x2fd   : > { %v1533_v15 = vadd.f32 %v1532_v11, %v1504_v29 }
 0x2ff   : > { %v1562_v20 = vadd.f32 %v1561_v23, %v1533_v15 }
 0x300   : > { %v1477_v0 = vpop.f32.mrf.mxu0  ;;  %v1506_v44 = vpop.f32.mrf.mxu1 }
 0x301   : > { %1577 = vst [vmem:[%s3082_s13 + $0x18] sm:$0xff] %v1562_v20  ;;  %v1478_v19 = vadd.f32 %v3078_v60, %v1477_v0 }
 0x303   : > { %v1507_v42 = vadd.f32 %v1506_v44, %v1478_v19 }
 0x305   : > { %v1536_v57 = vadd.f32 %v1535_v36, %v1507_v42 }
 0x307   : > { %v1565_v52 = vadd.f32 %v1564_v34, %v1536_v57 }
 0x308   : > { %v1479_v45 = vpop.f32.mrf.mxu0  ;;  %v1508_v58 = vpop.f32.mrf.mxu1 }
 0x309   : > { %1578 = vst [vmem:[%s3082_s13 + $0x20] sm:$0xff] %v1565_v52  ;;  %v1480_v5 = vadd.f32 %v3078_v60, %v1479_v45 }
 0x30b   : > { %v1509_v17 = vadd.f32 %v1508_v58, %v1480_v5 }
 0x30d   : > { %v1538_v41 = vadd.f32 %v1537_v37, %v1509_v17 }
 0x30f   : > { %v1567_v55 = vadd.f32 %v1566_v2, %v1538_v41 }
 0x310   : > { %v1482_v56 = vpop.f32.mrf.mxu0  ;;  %v1511_v46 = vpop.f32.mrf.mxu1 }
 0x311   : > { %1579 = vst [vmem:[%s3082_s13 + $0x28] sm:$0xff] %v1567_v55  ;;  %v1483_v38 = vadd.f32 %v3078_v60, %v1482_v56 }
 0x313   : > { %v1512_v63 = vadd.f32 %v1511_v46, %v1483_v38 }
 0x315   : > { %v1541_v9 = vadd.f32 %v1540_v7, %v1512_v63 }
 0x317   : > { %v1570_v54 = vadd.f32 %v1569_v33, %v1541_v9 }
 0x318   : > { %v1484_v1 = vpop.f32.mrf.mxu0  ;;  %v1513_v43 = vpop.f32.mrf.mxu1 }
 0x319   : > { %1580 = vst [vmem:[%s3082_s13 + $0x30] sm:$0xff] %v1570_v54  ;;  %v1485_v59 = vadd.f32 %v3078_v60, %v1484_v1 }
 0x31b   : > { %v1514_v27 = vadd.f32 %v1513_v43, %v1485_v59 }
 0x31d   : > { %v1543_v26 = vadd.f32 %v1542_v48, %v1514_v27 }
 0x31f   : > { %v1572_v31 = vadd.f32 %v1571_v3, %v1543_v26 }
 0x321   : > { %1581 = vst [vmem:[%s3082_s13 + $0x38] sm:$0xff] %v1572_v31 }
 0x322   : > { %2327 = shalt.err (!%p2324_p10)
}
 0x323   : > { %s2383_s16 = smov 128   ;;  %s2384_s13 = smov 8  }
 0x324   : > { %2076 = dma.vmem_to_hbm [thread:$0]  (%p2505_p3), %s1596_s29, 1024, %s1598_s7, %s1583_s25, %s2383_s16, %s2383_s16, %s2384_s13  }
 0x325 PF: > { %s1612_s17 = sand.u32 1, %s2362_s21   ;;  %p3150_p12 = scmp.ge.s32.totalorder %s2374_s24, 2 }
 0x326   : > { %s1613_s19 = scalar_lea.sflag [#allocation4], %s1612_s17 }
 0x327   : > { %p2093_p13 = pnand %p3150_p12, %p2455_p6 }
 0x329   : > { %p2094_p0 = pneg %p2093_p13 }
 0x32b   : > { %2357 = dma.done.wait (%p2094_p0), %s1613_s19, 1024  }
 0x32c   : > { %2359 = vsyncadd (%p2094_p0), %s1613_s19, 4294966272  ;;  %p21_p5 = scmp.ge.s32.totalorder %s2492_s10, 4   ;;  %s3151_s21 = smov %s2366_s22 }
 0x32d   : > { %s3152_s22 = smov %s2370_s23  ;;  %s3153_s23 = smov %s2501_s14 }
 0x32e   : > { %s3154_s24 = smov %s2492_s10  ;;  %23 = sbr.rel (!%p21_p5) target bundleno = 7 (0x7), region = 101 }
 0x333   :  { %1619 = vsyncpa [#allocation3], 1 }
 0x334   :  { %1621 = vsyncpa [#allocation3 + $0x1], 1 }
 0x335   :  { %1622 = vsyncpa [#allocation6], 1 }
 0x336   :  { %1623 = vsyncpa [#allocation9], 1 }
 0x337   :  { %1624 = vsyncpa [#allocation4], 1 }
 0x338   :  { %1626 = vsyncpa [#allocation4 + $0x1], 1 }

</bundles_post_ra>
